<compile_context>
chip_gen: v7x
topology: tpu7x:2x2x1
jax: 0.10.0
libtpu: 0.0.40
codegen_flags: <defaults>
</compile_context>

<pallas_src>
import functools

import jax
import jax.numpy as jnp
import numpy as np
from jax.experimental import pallas as pl
from jax.experimental.pallas import tpu as pltpu

MAX_LENGTH = 25


# ----------------------------- Pallas kernel ------------------------------ #
def _attn_decoder_kernel(
    emb_ref,        # (T, H)   embedded (post-dropout) decoder inputs
    h0_ref,         # (1, H)   initial hidden state (layer 0)
    enc_ref,        # (L, H)   padded encoder outputs, L = max_length
    w_attn_e_ref,   # (H, L)   attn weight, embedded half
    w_attn_h_ref,   # (H, L)   attn weight, hidden half
    b_attn_ref,     # (1, L)
    w_comb_c_ref,   # (H, H)   attn_combine weight, context half
    w_comb_e_ref,   # (H, H)   attn_combine weight, embedded half
    b_comb_ref,     # (1, H)
    w_ih_r_ref, w_ih_z_ref, w_ih_n_ref,    # (H, H) each, GRU input weights
    b_ih_r_ref, b_ih_z_ref, b_ih_n_ref,    # (1, H) each
    w_hh_r_ref, w_hh_z_ref, w_hh_n_ref,    # (H, H) each, GRU hidden weights
    b_hh_r_ref, b_hh_z_ref, b_hh_n_ref,    # (1, H) each
    w_out_ref,      # (H, Vp)  output projection, lane-padded
    b_out_ref,      # (1, Vp)  bias, padded lanes = -1e9
    logp_ref,       # out: (T, Vp) log-softmax outputs (lane-padded)
    h_out_ref,      # out: (1, H)  final hidden state
):
    T, H = emb_ref.shape

    emb = emb_ref[...]                                   # (T, H)
    h0 = h0_ref[...]                                     # (1, H)

    # --- attention weights: softmax over L of emb@We + (h0@Wh + b) ---
    h_term = (
        jnp.dot(h0, w_attn_h_ref[...], preferred_element_type=jnp.float32)
        + b_attn_ref[...]
    )                                                    # (1, L), computed once
    scores = (
        jnp.dot(emb, w_attn_e_ref[...], preferred_element_type=jnp.float32)
        + h_term
    )                                                    # (T, L)
    scores = scores - jnp.max(scores, axis=-1, keepdims=True)
    exp_s = jnp.exp(scores)
    inv_den = pl.reciprocal(jnp.sum(exp_s, axis=-1, keepdims=True), approx=True)
    attn = exp_s * inv_den                               # (T, L)

    # --- context vector:  attn @ encoder_outputs ---
    ctx = jnp.dot(attn, enc_ref[...], preferred_element_type=jnp.float32)  # (T, H)

    # --- attn_combine + relu (concat-free: split weights) ---
    rnn_in = jnp.maximum(
        jnp.dot(ctx, w_comb_c_ref[...], preferred_element_type=jnp.float32)
        + jnp.dot(emb, w_comb_e_ref[...], preferred_element_type=jnp.float32)
        + b_comb_ref[...],
        0.0,
    )                                                    # (T, H)

    # --- precompute input-side GRU gates for all timesteps (off serial path) ---
    gi_r = jnp.dot(rnn_in, w_ih_r_ref[...], preferred_element_type=jnp.float32) + b_ih_r_ref[...]
    gi_z = jnp.dot(rnn_in, w_ih_z_ref[...], preferred_element_type=jnp.float32) + b_ih_z_ref[...]
    gi_n = jnp.dot(rnn_in, w_ih_n_ref[...], preferred_element_type=jnp.float32) + b_ih_n_ref[...]

    w_hh_r = w_hh_r_ref[...]
    w_hh_z = w_hh_z_ref[...]
    w_hh_n = w_hh_n_ref[...]
    b_hh_r = b_hh_r_ref[...]
    b_hh_z = b_hh_z_ref[...]
    b_hh_n = b_hh_n_ref[...]

    # --- fully unrolled GRU recurrence (T is static); only gate math serial ---
    h = h0
    h_rows = []
    for t in range(T):
        gh_r = jnp.dot(h, w_hh_r, preferred_element_type=jnp.float32) + b_hh_r
        gh_z = jnp.dot(h, w_hh_z, preferred_element_type=jnp.float32) + b_hh_z
        gh_n = jnp.dot(h, w_hh_n, preferred_element_type=jnp.float32) + b_hh_n
        r = jax.nn.sigmoid(gi_r[t:t + 1, :] + gh_r)
        z = jax.nn.sigmoid(gi_z[t:t + 1, :] + gh_z)
        n = jnp.tanh(gi_n[t:t + 1, :] + r * gh_n)
        h = (1.0 - z) * n + z * h                        # (1, H)
        h_rows.append(h)

    h_out_ref[...] = h
    hs = jnp.concatenate(h_rows, axis=0)                 # (T, H)

    # --- hoisted output projection + batched log-softmax (lane-dense Vp) ---
    logits = (
        jnp.dot(hs, w_out_ref[...], preferred_element_type=jnp.float32)
        + b_out_ref[...]
    )                                                    # (T, Vp)
    m = jnp.max(logits, axis=-1, keepdims=True)
    lse = m + jnp.log(jnp.sum(jnp.exp(logits - m), axis=-1, keepdims=True))
    logp_ref[...] = logits - lse                         # single unmasked store


# ------------------------------ wrapper ----------------------------------- #
@functools.partial(jax.jit, static_argnames=("max_length",))
def attention_decoder_forward(x_tokens, hidden, encoder_outputs, params, max_length):
    """
    x_tokens:         (T, 1) int32 token ids
    hidden:           (1, 1, H)  (n_layers=1, batch=1, H)
    encoder_outputs:  (S, H) with S <= max_length
    returns (log_probs (T, V), hidden_out (1, 1, H))
    """
    T = x_tokens.shape[0]
    H = hidden.shape[-1]
    V = params["w_out"].shape[1]
    L = max_length
    S = encoder_outputs.shape[0]
    Vp = ((V + 127) // 128) * 128                        # lane-dense output width

    # glue: embedding gather, dropout == identity (eval), pad encoder outputs
    emb = jnp.take(params["embedding"], x_tokens.reshape(T), axis=0)   # (T, H)
    enc = jnp.pad(encoder_outputs, ((0, L - S), (0, 0)))               # (L, H)
    h0 = hidden[0]                                                     # (1, H)

    # split weights (concat elimination + per-gate split) -- free layout plumbing
    w_attn_e = params["w_attn"][:H]                      # (H, L)
    w_attn_h = params["w_attn"][H:]                      # (H, L)
    w_comb_c = params["w_comb"][:H]                      # (H, H) context half
    w_comb_e = params["w_comb"][H:]                      # (H, H) embedded half
    w_ih, b_ih = params["w_ih"], params["b_ih"]
    w_hh, b_hh = params["w_hh"], params["b_hh"]
    w_ih_r, w_ih_z, w_ih_n = w_ih[:, :H], w_ih[:, H:2 * H], w_ih[:, 2 * H:]
    b_ih_r, b_ih_z, b_ih_n = b_ih[:, :H], b_ih[:, H:2 * H], b_ih[:, 2 * H:]
    w_hh_r, w_hh_z, w_hh_n = w_hh[:, :H], w_hh[:, H:2 * H], w_hh[:, 2 * H:]
    b_hh_r, b_hh_z, b_hh_n = b_hh[:, :H], b_hh[:, H:2 * H], b_hh[:, 2 * H:]

    # lane-dense output: pad V -> Vp; padded bias = -1e9 so those lanes vanish
    # under log-softmax (exp(-1e9 - m) == 0)
    w_out_p = jnp.pad(params["w_out"], ((0, 0), (0, Vp - V)))
    b_out_p = jnp.pad(params["b_out"], ((0, 0), (0, Vp - V)),
                      constant_values=-1e9)

    operands = (
        emb, h0, enc,
        w_attn_e, w_attn_h, params["b_attn"],
        w_comb_c, w_comb_e, params["b_comb"],
        w_ih_r, w_ih_z, w_ih_n, b_ih_r, b_ih_z, b_ih_n,
        w_hh_r, w_hh_z, w_hh_n, b_hh_r, b_hh_z, b_hh_n,
        w_out_p, b_out_p,
    )

    vmem = pl.BlockSpec(memory_space=pltpu.MemorySpace.VMEM)
    logp_p, h_out = pl.pallas_call(
        _attn_decoder_kernel,
        out_shape=(
            jax.ShapeDtypeStruct((T, Vp), jnp.float32),
            jax.ShapeDtypeStruct((1, H), jnp.float32),
        ),
        in_specs=[vmem] * len(operands),
        out_specs=(vmem, vmem),
    )(*operands)

    return logp_p[:, :V], h_out[None]                    # (T, V), (1, 1, H)


# --------------------------- pure-JAX reference ---------------------------- #
def reference_forward(x_tokens, hidden, encoder_outputs, params, max_length):
    T = x_tokens.shape[0]
    H = hidden.shape[-1]
    L = max_length
    S = encoder_outputs.shape[0]
    emb = jnp.take(params["embedding"], x_tokens.reshape(T), axis=0)
    enc = jnp.pad(encoder_outputs, ((0, L - S), (0, 0)))
    h0 = hidden[0]
    cat = jnp.concatenate([emb, jnp.broadcast_to(h0, (T, H))], axis=-1)
    attn = jax.nn.softmax(cat @ params["w_attn"] + params["b_attn"], axis=-1)
    ctx = attn @ enc
    rnn_in = jax.nn.relu(
        jnp.concatenate([ctx, emb], axis=-1) @ params["w_comb"] + params["b_comb"]
    )

    def step(h, x_t):
        gi = x_t[None] @ params["w_ih"] + params["b_ih"]
        gh = h @ params["w_hh"] + params["b_hh"]
        r = jax.nn.sigmoid(gi[:, :H] + gh[:, :H])
        z = jax.nn.sigmoid(gi[:, H:2 * H] + gh[:, H:2 * H])
        n = jnp.tanh(gi[:, 2 * H:] + r * gh[:, 2 * H:])
        h_new = (1 - z) * n + z * h
        return h_new, h_new[0]

    h_fin, outs = jax.lax.scan(step, h0, rnn_in)
    logits = outs @ params["w_out"] + params["b_out"]
    logp = jax.nn.log_softmax(logits, axis=-1)
    return logp, h_fin[None]


# --------------------------------- main ------------------------------------ #
if __name__ == "__main__":
    hidden_size = 32
    output_size = 40          # vocabulary size
    max_length = MAX_LENGTH   # 25
    T = 8                     # target (decoder) sequence length
    S = 10                    # source sequence length (<= max_length)

    key = jax.random.PRNGKey(0)
    keys = jax.random.split(key, 16)

    def uni(k, shape, fan_in):
        bound = 1.0 / np.sqrt(fan_in)
        return jax.random.uniform(k, shape, jnp.float32, -bound, bound)

    H, V, L = hidden_size, output_size, max_length
    params = {
        "embedding": jax.random.normal(keys[0], (V, H), jnp.float32),
        # nn.Linear(2H, L): torch weight (L, 2H) -> stored transposed (2H, L)
        "w_attn": uni(keys[1], (2 * H, L), 2 * H),
        "b_attn": uni(keys[2], (1, L), 2 * H),
        # nn.Linear(2H, H)
        "w_comb": uni(keys[3], (2 * H, H), 2 * H),
        "b_comb": uni(keys[4], (1, H), 2 * H),
        # nn.GRU(H, H): weight_ih_l0 (3H, H) -> (H, 3H), gate order [r, z, n]
        "w_ih": uni(keys[5], (H, 3 * H), H),
        "b_ih": uni(keys[6], (1, 3 * H), H),
        "w_hh": uni(keys[7], (H, 3 * H), H),
        "b_hh": uni(keys[8], (1, 3 * H), H),
        # nn.Linear(H, V)
        "w_out": uni(keys[9], (H, V), H),
        "b_out": uni(keys[10], (1, V), H),
    }

    x_tokens = jax.random.randint(keys[11], (T, 1), 0, V, dtype=jnp.int32)
    hidden = jax.random.normal(keys[12], (1, 1, H), jnp.float32)
    encoder_outputs = jax.random.normal(keys[13], (S, H), jnp.float32)

    logp, h_out = attention_decoder_forward(
        x_tokens, hidden, encoder_outputs, params, max_length
    )
    jax.block_until_ready((logp, h_out))

    ref_logp, ref_h = reference_forward(
        x_tokens, hidden, encoder_outputs, params, max_length
    )
    assert logp.shape == (T, V) and h_out.shape == (1, 1, H)
    # Tolerance 5e-3: the only intentional numeric deviation from the reference
    # is the EUP approximate reciprocal in the attention-softmax denominator
    # (pl.reciprocal approx=True); everything else is exact f32.
    np.testing.assert_allclose(np.asarray(logp), np.asarray(ref_logp),
                               rtol=5e-3, atol=5e-3)
    np.testing.assert_allclose(np.asarray(h_out), np.asarray(ref_h),
                               rtol=5e-3, atol=5e-3)

    print("KERNEL_OK")
</pallas_src>

<mosaic_0001>
module attributes {stable_mosaic.version = 11 : i64} {
  func.func @_attn_decoder_kernel(%arg0: memref<8x32xf32, #tpu.memory_space<vmem>>, %arg1: memref<1x32xf32, #tpu.memory_space<vmem>>, %arg2: memref<25x32xf32, #tpu.memory_space<vmem>>, %arg3: memref<32x25xf32, #tpu.memory_space<vmem>>, %arg4: memref<32x25xf32, #tpu.memory_space<vmem>>, %arg5: memref<1x25xf32, #tpu.memory_space<vmem>>, %arg6: memref<32x32xf32, #tpu.memory_space<vmem>>, %arg7: memref<32x32xf32, #tpu.memory_space<vmem>>, %arg8: memref<1x32xf32, #tpu.memory_space<vmem>>, %arg9: memref<32x32xf32, #tpu.memory_space<vmem>>, %arg10: memref<32x32xf32, #tpu.memory_space<vmem>>, %arg11: memref<32x32xf32, #tpu.memory_space<vmem>>, %arg12: memref<1x32xf32, #tpu.memory_space<vmem>>, %arg13: memref<1x32xf32, #tpu.memory_space<vmem>>, %arg14: memref<1x32xf32, #tpu.memory_space<vmem>>, %arg15: memref<32x32xf32, #tpu.memory_space<vmem>>, %arg16: memref<32x32xf32, #tpu.memory_space<vmem>>, %arg17: memref<32x32xf32, #tpu.memory_space<vmem>>, %arg18: memref<1x32xf32, #tpu.memory_space<vmem>>, %arg19: memref<1x32xf32, #tpu.memory_space<vmem>>, %arg20: memref<1x32xf32, #tpu.memory_space<vmem>>, %arg21: memref<32x128xf32, #tpu.memory_space<vmem>>, %arg22: memref<1x128xf32, #tpu.memory_space<vmem>>, %arg23: memref<8x128xf32, #tpu.memory_space<vmem>>, %arg24: memref<1x32xf32, #tpu.memory_space<vmem>>) attributes {dimension_semantics = [], scalar_prefetch = 0 : i64, scratch_operands = 0 : i64, tpu.core_type = #tpu.core_type<tc>} {
    %c0 = arith.constant 0 : index
    %c0_0 = arith.constant 0 : index
    %0 = vector.load %arg0[%c0, %c0_0] : memref<8x32xf32, #tpu.memory_space<vmem>>, vector<8x32xf32>
    %c0_1 = arith.constant 0 : index
    %c0_2 = arith.constant 0 : index
    %1 = vector.load %arg1[%c0_1, %c0_2] : memref<1x32xf32, #tpu.memory_space<vmem>>, vector<1x32xf32>
    %c0_3 = arith.constant 0 : index
    %c0_4 = arith.constant 0 : index
    %2 = vector.load %arg4[%c0_3, %c0_4] : memref<32x25xf32, #tpu.memory_space<vmem>>, vector<32x25xf32>
    %cst = arith.constant dense<0.000000e+00> : vector<1x25xf32>
    %3 = tpu.matmul %1, %2, %cst {dimension_numbers = #tpu.dot_dimension_numbers<[1], [0], [0], [1], [0, 0, 1, 1], [], []>} : vector<1x32xf32>, vector<32x25xf32>, vector<1x25xf32> -> vector<1x25xf32>
    %c0_5 = arith.constant 0 : index
    %c0_6 = arith.constant 0 : index
    %4 = vector.load %arg5[%c0_5, %c0_6] : memref<1x25xf32, #tpu.memory_space<vmem>>, vector<1x25xf32>
    %5 = arith.addf %3, %4 : vector<1x25xf32>
    %c0_7 = arith.constant 0 : index
    %c0_8 = arith.constant 0 : index
    %6 = vector.load %arg3[%c0_7, %c0_8] : memref<32x25xf32, #tpu.memory_space<vmem>>, vector<32x25xf32>
    %cst_9 = arith.constant dense<0.000000e+00> : vector<8x25xf32>
    %7 = tpu.matmul %0, %6, %cst_9 {dimension_numbers = #tpu.dot_dimension_numbers<[1], [0], [0], [1], [0, 0, 1, 1], [], []>} : vector<8x32xf32>, vector<32x25xf32>, vector<8x25xf32> -> vector<8x25xf32>
    %8 = vector.broadcast %5 : vector<1x25xf32> to vector<8x25xf32>
    %9 = arith.addf %7, %8 : vector<8x25xf32>
    %cst_10 = arith.constant dense<0xFF800000> : vector<8xf32>
    %10 = vector.multi_reduction <maximumf>, %9, %cst_10 [1] : vector<8x25xf32> to vector<8xf32>
    %11 = vector.shape_cast %10 : vector<8xf32> to vector<8x1xf32>
    %12 = vector.broadcast %11 : vector<8x1xf32> to vector<8x25xf32>
    %13 = arith.subf %9, %12 : vector<8x25xf32>
    %14 = math.exp %13 : vector<8x25xf32>
    %cst_11 = arith.constant dense<0.000000e+00> : vector<8xf32>
    %15 = vector.multi_reduction <add>, %14, %cst_11 [1] : vector<8x25xf32> to vector<8xf32>
    %16 = vector.shape_cast %15 : vector<8xf32> to vector<8x1xf32>
    %17 = tpu.reciprocal %16 {approx = true} : vector<8x1xf32> -> vector<8x1xf32>
    %18 = vector.broadcast %17 : vector<8x1xf32> to vector<8x25xf32>
    %19 = arith.mulf %14, %18 : vector<8x25xf32>
    %c0_12 = arith.constant 0 : index
    %c0_13 = arith.constant 0 : index
    %20 = vector.load %arg2[%c0_12, %c0_13] : memref<25x32xf32, #tpu.memory_space<vmem>>, vector<25x32xf32>
    %cst_14 = arith.constant dense<0.000000e+00> : vector<8x32xf32>
    %21 = tpu.matmul %19, %20, %cst_14 {dimension_numbers = #tpu.dot_dimension_numbers<[1], [0], [0], [1], [0, 0, 1, 1], [], []>} : vector<8x25xf32>, vector<25x32xf32>, vector<8x32xf32> -> vector<8x32xf32>
    %c0_15 = arith.constant 0 : index
    %c0_16 = arith.constant 0 : index
    %22 = vector.load %arg6[%c0_15, %c0_16] : memref<32x32xf32, #tpu.memory_space<vmem>>, vector<32x32xf32>
    %cst_17 = arith.constant dense<0.000000e+00> : vector<8x32xf32>
    %23 = tpu.matmul %21, %22, %cst_17 {dimension_numbers = #tpu.dot_dimension_numbers<[1], [0], [0], [1], [0, 0, 1, 1], [], []>} : vector<8x32xf32>, vector<32x32xf32>, vector<8x32xf32> -> vector<8x32xf32>
    %c0_18 = arith.constant 0 : index
    %c0_19 = arith.constant 0 : index
    %24 = vector.load %arg7[%c0_18, %c0_19] : memref<32x32xf32, #tpu.memory_space<vmem>>, vector<32x32xf32>
    %cst_20 = arith.constant dense<0.000000e+00> : vector<8x32xf32>
    %25 = tpu.matmul %0, %24, %cst_20 {dimension_numbers = #tpu.dot_dimension_numbers<[1], [0], [0], [1], [0, 0, 1, 1], [], []>} : vector<8x32xf32>, vector<32x32xf32>, vector<8x32xf32> -> vector<8x32xf32>
    %26 = arith.addf %23, %25 : vector<8x32xf32>
    %c0_21 = arith.constant 0 : index
    %c0_22 = arith.constant 0 : index
    %27 = vector.load %arg8[%c0_21, %c0_22] : memref<1x32xf32, #tpu.memory_space<vmem>>, vector<1x32xf32>
    %28 = vector.broadcast %27 : vector<1x32xf32> to vector<8x32xf32>
    %29 = arith.addf %26, %28 : vector<8x32xf32>
    %cst_23 = arith.constant 0.000000e+00 : f32
    %30 = vector.broadcast %cst_23 : f32 to vector<8x32xf32>
    %31 = arith.maximumf %29, %30 : vector<8x32xf32>
    %c0_24 = arith.constant 0 : index
    %c0_25 = arith.constant 0 : index
    %32 = vector.load %arg9[%c0_24, %c0_25] : memref<32x32xf32, #tpu.memory_space<vmem>>, vector<32x32xf32>
    %cst_26 = arith.constant dense<0.000000e+00> : vector<8x32xf32>
    %33 = tpu.matmul %31, %32, %cst_26 {dimension_numbers = #tpu.dot_dimension_numbers<[1], [0], [0], [1], [0, 0, 1, 1], [], []>} : vector<8x32xf32>, vector<32x32xf32>, vector<8x32xf32> -> vector<8x32xf32>
    %c0_27 = arith.constant 0 : index
    %c0_28 = arith.constant 0 : index
    %34 = vector.load %arg12[%c0_27, %c0_28] : memref<1x32xf32, #tpu.memory_space<vmem>>, vector<1x32xf32>
    %35 = vector.broadcast %34 : vector<1x32xf32> to vector<8x32xf32>
    %36 = arith.addf %33, %35 : vector<8x32xf32>
    %c0_29 = arith.constant 0 : index
    %c0_30 = arith.constant 0 : index
    %37 = vector.load %arg10[%c0_29, %c0_30] : memref<32x32xf32, #tpu.memory_space<vmem>>, vector<32x32xf32>
    %cst_31 = arith.constant dense<0.000000e+00> : vector<8x32xf32>
    %38 = tpu.matmul %31, %37, %cst_31 {dimension_numbers = #tpu.dot_dimension_numbers<[1], [0], [0], [1], [0, 0, 1, 1], [], []>} : vector<8x32xf32>, vector<32x32xf32>, vector<8x32xf32> -> vector<8x32xf32>
    %c0_32 = arith.constant 0 : index
    %c0_33 = arith.constant 0 : index
    %39 = vector.load %arg13[%c0_32, %c0_33] : memref<1x32xf32, #tpu.memory_space<vmem>>, vector<1x32xf32>
    %40 = vector.broadcast %39 : vector<1x32xf32> to vector<8x32xf32>
    %41 = arith.addf %38, %40 : vector<8x32xf32>
    %c0_34 = arith.constant 0 : index
    %c0_35 = arith.constant 0 : index
    %42 = vector.load %arg11[%c0_34, %c0_35] : memref<32x32xf32, #tpu.memory_space<vmem>>, vector<32x32xf32>
    %cst_36 = arith.constant dense<0.000000e+00> : vector<8x32xf32>
    %43 = tpu.matmul %31, %42, %cst_36 {dimension_numbers = #tpu.dot_dimension_numbers<[1], [0], [0], [1], [0, 0, 1, 1], [], []>} : vector<8x32xf32>, vector<32x32xf32>, vector<8x32xf32> -> vector<8x32xf32>
    %c0_37 = arith.constant 0 : index
    %c0_38 = arith.constant 0 : index
    %44 = vector.load %arg14[%c0_37, %c0_38] : memref<1x32xf32, #tpu.memory_space<vmem>>, vector<1x32xf32>
    %45 = vector.broadcast %44 : vector<1x32xf32> to vector<8x32xf32>
    %46 = arith.addf %43, %45 : vector<8x32xf32>
    %c0_39 = arith.constant 0 : index
    %c0_40 = arith.constant 0 : index
    %47 = vector.load %arg15[%c0_39, %c0_40] : memref<32x32xf32, #tpu.memory_space<vmem>>, vector<32x32xf32>
    %c0_41 = arith.constant 0 : index
    %c0_42 = arith.constant 0 : index
    %48 = vector.load %arg16[%c0_41, %c0_42] : memref<32x32xf32, #tpu.memory_space<vmem>>, vector<32x32xf32>
    %c0_43 = arith.constant 0 : index
    %c0_44 = arith.constant 0 : index
    %49 = vector.load %arg17[%c0_43, %c0_44] : memref<32x32xf32, #tpu.memory_space<vmem>>, vector<32x32xf32>
    %c0_45 = arith.constant 0 : index
    %c0_46 = arith.constant 0 : index
    %50 = vector.load %arg18[%c0_45, %c0_46] : memref<1x32xf32, #tpu.memory_space<vmem>>, vector<1x32xf32>
    %c0_47 = arith.constant 0 : index
    %c0_48 = arith.constant 0 : index
    %51 = vector.load %arg19[%c0_47, %c0_48] : memref<1x32xf32, #tpu.memory_space<vmem>>, vector<1x32xf32>
    %c0_49 = arith.constant 0 : index
    %c0_50 = arith.constant 0 : index
    %52 = vector.load %arg20[%c0_49, %c0_50] : memref<1x32xf32, #tpu.memory_space<vmem>>, vector<1x32xf32>
    %cst_51 = arith.constant dense<0.000000e+00> : vector<1x32xf32>
    %53 = tpu.matmul %1, %47, %cst_51 {dimension_numbers = #tpu.dot_dimension_numbers<[1], [0], [0], [1], [0, 0, 1, 1], [], []>} : vector<1x32xf32>, vector<32x32xf32>, vector<1x32xf32> -> vector<1x32xf32>
    %54 = arith.addf %53, %50 : vector<1x32xf32>
    %cst_52 = arith.constant dense<0.000000e+00> : vector<1x32xf32>
    %55 = tpu.matmul %1, %48, %cst_52 {dimension_numbers = #tpu.dot_dimension_numbers<[1], [0], [0], [1], [0, 0, 1, 1], [], []>} : vector<1x32xf32>, vector<32x32xf32>, vector<1x32xf32> -> vector<1x32xf32>
    %56 = arith.addf %55, %51 : vector<1x32xf32>
    %cst_53 = arith.constant dense<0.000000e+00> : vector<1x32xf32>
    %57 = tpu.matmul %1, %49, %cst_53 {dimension_numbers = #tpu.dot_dimension_numbers<[1], [0], [0], [1], [0, 0, 1, 1], [], []>} : vector<1x32xf32>, vector<32x32xf32>, vector<1x32xf32> -> vector<1x32xf32>
    %58 = arith.addf %57, %52 : vector<1x32xf32>
    %59 = vector.extract_strided_slice %36 {offsets = [0, 0], sizes = [1, 32], strides = [1, 1]} : vector<8x32xf32> to vector<1x32xf32>
    %60 = arith.addf %59, %54 : vector<1x32xf32>
    %61 = arith.negf %60 : vector<1x32xf32>
    %62 = math.exp %61 : vector<1x32xf32>
    %cst_54 = arith.constant 1.000000e+00 : f32
    %63 = vector.broadcast %cst_54 : f32 to vector<1x32xf32>
    %64 = arith.addf %63, %62 : vector<1x32xf32>
    %65 = arith.divf %63, %64 : vector<1x32xf32>
    %66 = vector.extract_strided_slice %41 {offsets = [0, 0], sizes = [1, 32], strides = [1, 1]} : vector<8x32xf32> to vector<1x32xf32>
    %67 = arith.addf %66, %56 : vector<1x32xf32>
    %68 = arith.negf %67 : vector<1x32xf32>
    %69 = math.exp %68 : vector<1x32xf32>
    %cst_55 = arith.constant 1.000000e+00 : f32
    %70 = vector.broadcast %cst_55 : f32 to vector<1x32xf32>
    %71 = arith.addf %70, %69 : vector<1x32xf32>
    %72 = arith.divf %70, %71 : vector<1x32xf32>
    %73 = vector.extract_strided_slice %46 {offsets = [0, 0], sizes = [1, 32], strides = [1, 1]} : vector<8x32xf32> to vector<1x32xf32>
    %74 = arith.mulf %65, %58 : vector<1x32xf32>
    %75 = arith.addf %73, %74 : vector<1x32xf32>
    %76 = math.tanh %75 : vector<1x32xf32>
    %cst_56 = arith.constant 1.000000e+00 : f32
    %77 = vector.broadcast %cst_56 : f32 to vector<1x32xf32>
    %78 = arith.subf %77, %72 : vector<1x32xf32>
    %79 = arith.mulf %78, %76 : vector<1x32xf32>
    %80 = arith.mulf %72, %1 : vector<1x32xf32>
    %81 = arith.addf %79, %80 : vector<1x32xf32>
    %cst_57 = arith.constant dense<0.000000e+00> : vector<1x32xf32>
    %82 = tpu.matmul %81, %47, %cst_57 {dimension_numbers = #tpu.dot_dimension_numbers<[1], [0], [0], [1], [0, 0, 1, 1], [], []>} : vector<1x32xf32>, vector<32x32xf32>, vector<1x32xf32> -> vector<1x32xf32>
    %83 = arith.addf %82, %50 : vector<1x32xf32>
    %cst_58 = arith.constant dense<0.000000e+00> : vector<1x32xf32>
    %84 = tpu.matmul %81, %48, %cst_58 {dimension_numbers = #tpu.dot_dimension_numbers<[1], [0], [0], [1], [0, 0, 1, 1], [], []>} : vector<1x32xf32>, vector<32x32xf32>, vector<1x32xf32> -> vector<1x32xf32>
    %85 = arith.addf %84, %51 : vector<1x32xf32>
    %cst_59 = arith.constant dense<0.000000e+00> : vector<1x32xf32>
    %86 = tpu.matmul %81, %49, %cst_59 {dimension_numbers = #tpu.dot_dimension_numbers<[1], [0], [0], [1], [0, 0, 1, 1], [], []>} : vector<1x32xf32>, vector<32x32xf32>, vector<1x32xf32> -> vector<1x32xf32>
    %87 = arith.addf %86, %52 : vector<1x32xf32>
    %88 = vector.extract_strided_slice %36 {offsets = [1, 0], sizes = [1, 32], strides = [1, 1]} : vector<8x32xf32> to vector<1x32xf32>
    %89 = arith.addf %88, %83 : vector<1x32xf32>
    %90 = arith.negf %89 : vector<1x32xf32>
    %91 = math.exp %90 : vector<1x32xf32>
    %cst_60 = arith.constant 1.000000e+00 : f32
    %92 = vector.broadcast %cst_60 : f32 to vector<1x32xf32>
    %93 = arith.addf %92, %91 : vector<1x32xf32>
    %94 = arith.divf %92, %93 : vector<1x32xf32>
    %95 = vector.extract_strided_slice %41 {offsets = [1, 0], sizes = [1, 32], strides = [1, 1]} : vector<8x32xf32> to vector<1x32xf32>
    %96 = arith.addf %95, %85 : vector<1x32xf32>
    %97 = arith.negf %96 : vector<1x32xf32>
    %98 = math.exp %97 : vector<1x32xf32>
    %cst_61 = arith.constant 1.000000e+00 : f32
    %99 = vector.broadcast %cst_61 : f32 to vector<1x32xf32>
    %100 = arith.addf %99, %98 : vector<1x32xf32>
    %101 = arith.divf %99, %100 : vector<1x32xf32>
    %102 = vector.extract_strided_slice %46 {offsets = [1, 0], sizes = [1, 32], strides = [1, 1]} : vector<8x32xf32> to vector<1x32xf32>
    %103 = arith.mulf %94, %87 : vector<1x32xf32>
    %104 = arith.addf %102, %103 : vector<1x32xf32>
    %105 = math.tanh %104 : vector<1x32xf32>
    %cst_62 = arith.constant 1.000000e+00 : f32
    %106 = vector.broadcast %cst_62 : f32 to vector<1x32xf32>
    %107 = arith.subf %106, %101 : vector<1x32xf32>
    %108 = arith.mulf %107, %105 : vector<1x32xf32>
    %109 = arith.mulf %101, %81 : vector<1x32xf32>
    %110 = arith.addf %108, %109 : vector<1x32xf32>
    %cst_63 = arith.constant dense<0.000000e+00> : vector<1x32xf32>
    %111 = tpu.matmul %110, %47, %cst_63 {dimension_numbers = #tpu.dot_dimension_numbers<[1], [0], [0], [1], [0, 0, 1, 1], [], []>} : vector<1x32xf32>, vector<32x32xf32>, vector<1x32xf32> -> vector<1x32xf32>
    %112 = arith.addf %111, %50 : vector<1x32xf32>
    %cst_64 = arith.constant dense<0.000000e+00> : vector<1x32xf32>
    %113 = tpu.matmul %110, %48, %cst_64 {dimension_numbers = #tpu.dot_dimension_numbers<[1], [0], [0], [1], [0, 0, 1, 1], [], []>} : vector<1x32xf32>, vector<32x32xf32>, vector<1x32xf32> -> vector<1x32xf32>
    %114 = arith.addf %113, %51 : vector<1x32xf32>
    %cst_65 = arith.constant dense<0.000000e+00> : vector<1x32xf32>
    %115 = tpu.matmul %110, %49, %cst_65 {dimension_numbers = #tpu.dot_dimension_numbers<[1], [0], [0], [1], [0, 0, 1, 1], [], []>} : vector<1x32xf32>, vector<32x32xf32>, vector<1x32xf32> -> vector<1x32xf32>
    %116 = arith.addf %115, %52 : vector<1x32xf32>
    %117 = vector.extract_strided_slice %36 {offsets = [2, 0], sizes = [1, 32], strides = [1, 1]} : vector<8x32xf32> to vector<1x32xf32>
    %118 = arith.addf %117, %112 : vector<1x32xf32>
    %119 = arith.negf %118 : vector<1x32xf32>
    %120 = math.exp %119 : vector<1x32xf32>
    %cst_66 = arith.constant 1.000000e+00 : f32
    %121 = vector.broadcast %cst_66 : f32 to vector<1x32xf32>
    %122 = arith.addf %121, %120 : vector<1x32xf32>
    %123 = arith.divf %121, %122 : vector<1x32xf32>
    %124 = vector.extract_strided_slice %41 {offsets = [2, 0], sizes = [1, 32], strides = [1, 1]} : vector<8x32xf32> to vector<1x32xf32>
    %125 = arith.addf %124, %114 : vector<1x32xf32>
    %126 = arith.negf %125 : vector<1x32xf32>
    %127 = math.exp %126 : vector<1x32xf32>
    %cst_67 = arith.constant 1.000000e+00 : f32
    %128 = vector.broadcast %cst_67 : f32 to vector<1x32xf32>
    %129 = arith.addf %128, %127 : vector<1x32xf32>
    %130 = arith.divf %128, %129 : vector<1x32xf32>
    %131 = vector.extract_strided_slice %46 {offsets = [2, 0], sizes = [1, 32], strides = [1, 1]} : vector<8x32xf32> to vector<1x32xf32>
    %132 = arith.mulf %123, %116 : vector<1x32xf32>
    %133 = arith.addf %131, %132 : vector<1x32xf32>
    %134 = math.tanh %133 : vector<1x32xf32>
    %cst_68 = arith.constant 1.000000e+00 : f32
    %135 = vector.broadcast %cst_68 : f32 to vector<1x32xf32>
    %136 = arith.subf %135, %130 : vector<1x32xf32>
    %137 = arith.mulf %136, %134 : vector<1x32xf32>
    %138 = arith.mulf %130, %110 : vector<1x32xf32>
    %139 = arith.addf %137, %138 : vector<1x32xf32>
    %cst_69 = arith.constant dense<0.000000e+00> : vector<1x32xf32>
    %140 = tpu.matmul %139, %47, %cst_69 {dimension_numbers = #tpu.dot_dimension_numbers<[1], [0], [0], [1], [0, 0, 1, 1], [], []>} : vector<1x32xf32>, vector<32x32xf32>, vector<1x32xf32> -> vector<1x32xf32>
    %141 = arith.addf %140, %50 : vector<1x32xf32>
    %cst_70 = arith.constant dense<0.000000e+00> : vector<1x32xf32>
    %142 = tpu.matmul %139, %48, %cst_70 {dimension_numbers = #tpu.dot_dimension_numbers<[1], [0], [0], [1], [0, 0, 1, 1], [], []>} : vector<1x32xf32>, vector<32x32xf32>, vector<1x32xf32> -> vector<1x32xf32>
    %143 = arith.addf %142, %51 : vector<1x32xf32>
    %cst_71 = arith.constant dense<0.000000e+00> : vector<1x32xf32>
    %144 = tpu.matmul %139, %49, %cst_71 {dimension_numbers = #tpu.dot_dimension_numbers<[1], [0], [0], [1], [0, 0, 1, 1], [], []>} : vector<1x32xf32>, vector<32x32xf32>, vector<1x32xf32> -> vector<1x32xf32>
    %145 = arith.addf %144, %52 : vector<1x32xf32>
    %146 = vector.extract_strided_slice %36 {offsets = [3, 0], sizes = [1, 32], strides = [1, 1]} : vector<8x32xf32> to vector<1x32xf32>
    %147 = arith.addf %146, %141 : vector<1x32xf32>
    %148 = arith.negf %147 : vector<1x32xf32>
    %149 = math.exp %148 : vector<1x32xf32>
    %cst_72 = arith.constant 1.000000e+00 : f32
    %150 = vector.broadcast %cst_72 : f32 to vector<1x32xf32>
    %151 = arith.addf %150, %149 : vector<1x32xf32>
    %152 = arith.divf %150, %151 : vector<1x32xf32>
    %153 = vector.extract_strided_slice %41 {offsets = [3, 0], sizes = [1, 32], strides = [1, 1]} : vector<8x32xf32> to vector<1x32xf32>
    %154 = arith.addf %153, %143 : vector<1x32xf32>
    %155 = arith.negf %154 : vector<1x32xf32>
    %156 = math.exp %155 : vector<1x32xf32>
    %cst_73 = arith.constant 1.000000e+00 : f32
    %157 = vector.broadcast %cst_73 : f32 to vector<1x32xf32>
    %158 = arith.addf %157, %156 : vector<1x32xf32>
    %159 = arith.divf %157, %158 : vector<1x32xf32>
    %160 = vector.extract_strided_slice %46 {offsets = [3, 0], sizes = [1, 32], strides = [1, 1]} : vector<8x32xf32> to vector<1x32xf32>
    %161 = arith.mulf %152, %145 : vector<1x32xf32>
    %162 = arith.addf %160, %161 : vector<1x32xf32>
    %163 = math.tanh %162 : vector<1x32xf32>
    %cst_74 = arith.constant 1.000000e+00 : f32
    %164 = vector.broadcast %cst_74 : f32 to vector<1x32xf32>
    %165 = arith.subf %164, %159 : vector<1x32xf32>
    %166 = arith.mulf %165, %163 : vector<1x32xf32>
    %167 = arith.mulf %159, %139 : vector<1x32xf32>
    %168 = arith.addf %166, %167 : vector<1x32xf32>
    %cst_75 = arith.constant dense<0.000000e+00> : vector<1x32xf32>
    %169 = tpu.matmul %168, %47, %cst_75 {dimension_numbers = #tpu.dot_dimension_numbers<[1], [0], [0], [1], [0, 0, 1, 1], [], []>} : vector<1x32xf32>, vector<32x32xf32>, vector<1x32xf32> -> vector<1x32xf32>
    %170 = arith.addf %169, %50 : vector<1x32xf32>
    %cst_76 = arith.constant dense<0.000000e+00> : vector<1x32xf32>
    %171 = tpu.matmul %168, %48, %cst_76 {dimension_numbers = #tpu.dot_dimension_numbers<[1], [0], [0], [1], [0, 0, 1, 1], [], []>} : vector<1x32xf32>, vector<32x32xf32>, vector<1x32xf32> -> vector<1x32xf32>
    %172 = arith.addf %171, %51 : vector<1x32xf32>
    %cst_77 = arith.constant dense<0.000000e+00> : vector<1x32xf32>
    %173 = tpu.matmul %168, %49, %cst_77 {dimension_numbers = #tpu.dot_dimension_numbers<[1], [0], [0], [1], [0, 0, 1, 1], [], []>} : vector<1x32xf32>, vector<32x32xf32>, vector<1x32xf32> -> vector<1x32xf32>
    %174 = arith.addf %173, %52 : vector<1x32xf32>
    %175 = vector.extract_strided_slice %36 {offsets = [4, 0], sizes = [1, 32], strides = [1, 1]} : vector<8x32xf32> to vector<1x32xf32>
    %176 = arith.addf %175, %170 : vector<1x32xf32>
    %177 = arith.negf %176 : vector<1x32xf32>
    %178 = math.exp %177 : vector<1x32xf32>
    %cst_78 = arith.constant 1.000000e+00 : f32
    %179 = vector.broadcast %cst_78 : f32 to vector<1x32xf32>
    %180 = arith.addf %179, %178 : vector<1x32xf32>
    %181 = arith.divf %179, %180 : vector<1x32xf32>
    %182 = vector.extract_strided_slice %41 {offsets = [4, 0], sizes = [1, 32], strides = [1, 1]} : vector<8x32xf32> to vector<1x32xf32>
    %183 = arith.addf %182, %172 : vector<1x32xf32>
    %184 = arith.negf %183 : vector<1x32xf32>
    %185 = math.exp %184 : vector<1x32xf32>
    %cst_79 = arith.constant 1.000000e+00 : f32
    %186 = vector.broadcast %cst_79 : f32 to vector<1x32xf32>
    %187 = arith.addf %186, %185 : vector<1x32xf32>
    %188 = arith.divf %186, %187 : vector<1x32xf32>
    %189 = vector.extract_strided_slice %46 {offsets = [4, 0], sizes = [1, 32], strides = [1, 1]} : vector<8x32xf32> to vector<1x32xf32>
    %190 = arith.mulf %181, %174 : vector<1x32xf32>
    %191 = arith.addf %189, %190 : vector<1x32xf32>
    %192 = math.tanh %191 : vector<1x32xf32>
    %cst_80 = arith.constant 1.000000e+00 : f32
    %193 = vector.broadcast %cst_80 : f32 to vector<1x32xf32>
    %194 = arith.subf %193, %188 : vector<1x32xf32>
    %195 = arith.mulf %194, %192 : vector<1x32xf32>
    %196 = arith.mulf %188, %168 : vector<1x32xf32>
    %197 = arith.addf %195, %196 : vector<1x32xf32>
    %cst_81 = arith.constant dense<0.000000e+00> : vector<1x32xf32>
    %198 = tpu.matmul %197, %47, %cst_81 {dimension_numbers = #tpu.dot_dimension_numbers<[1], [0], [0], [1], [0, 0, 1, 1], [], []>} : vector<1x32xf32>, vector<32x32xf32>, vector<1x32xf32> -> vector<1x32xf32>
    %199 = arith.addf %198, %50 : vector<1x32xf32>
    %cst_82 = arith.constant dense<0.000000e+00> : vector<1x32xf32>
    %200 = tpu.matmul %197, %48, %cst_82 {dimension_numbers = #tpu.dot_dimension_numbers<[1], [0], [0], [1], [0, 0, 1, 1], [], []>} : vector<1x32xf32>, vector<32x32xf32>, vector<1x32xf32> -> vector<1x32xf32>
    %201 = arith.addf %200, %51 : vector<1x32xf32>
    %cst_83 = arith.constant dense<0.000000e+00> : vector<1x32xf32>
    %202 = tpu.matmul %197, %49, %cst_83 {dimension_numbers = #tpu.dot_dimension_numbers<[1], [0], [0], [1], [0, 0, 1, 1], [], []>} : vector<1x32xf32>, vector<32x32xf32>, vector<1x32xf32> -> vector<1x32xf32>
    %203 = arith.addf %202, %52 : vector<1x32xf32>
    %204 = vector.extract_strided_slice %36 {offsets = [5, 0], sizes = [1, 32], strides = [1, 1]} : vector<8x32xf32> to vector<1x32xf32>
    %205 = arith.addf %204, %199 : vector<1x32xf32>
    %206 = arith.negf %205 : vector<1x32xf32>
    %207 = math.exp %206 : vector<1x32xf32>
    %cst_84 = arith.constant 1.000000e+00 : f32
    %208 = vector.broadcast %cst_84 : f32 to vector<1x32xf32>
    %209 = arith.addf %208, %207 : vector<1x32xf32>
    %210 = arith.divf %208, %209 : vector<1x32xf32>
    %211 = vector.extract_strided_slice %41 {offsets = [5, 0], sizes = [1, 32], strides = [1, 1]} : vector<8x32xf32> to vector<1x32xf32>
    %212 = arith.addf %211, %201 : vector<1x32xf32>
    %213 = arith.negf %212 : vector<1x32xf32>
    %214 = math.exp %213 : vector<1x32xf32>
    %cst_85 = arith.constant 1.000000e+00 : f32
    %215 = vector.broadcast %cst_85 : f32 to vector<1x32xf32>
    %216 = arith.addf %215, %214 : vector<1x32xf32>
    %217 = arith.divf %215, %216 : vector<1x32xf32>
    %218 = vector.extract_strided_slice %46 {offsets = [5, 0], sizes = [1, 32], strides = [1, 1]} : vector<8x32xf32> to vector<1x32xf32>
    %219 = arith.mulf %210, %203 : vector<1x32xf32>
    %220 = arith.addf %218, %219 : vector<1x32xf32>
    %221 = math.tanh %220 : vector<1x32xf32>
    %cst_86 = arith.constant 1.000000e+00 : f32
    %222 = vector.broadcast %cst_86 : f32 to vector<1x32xf32>
    %223 = arith.subf %222, %217 : vector<1x32xf32>
    %224 = arith.mulf %223, %221 : vector<1x32xf32>
    %225 = arith.mulf %217, %197 : vector<1x32xf32>
    %226 = arith.addf %224, %225 : vector<1x32xf32>
    %cst_87 = arith.constant dense<0.000000e+00> : vector<1x32xf32>
    %227 = tpu.matmul %226, %47, %cst_87 {dimension_numbers = #tpu.dot_dimension_numbers<[1], [0], [0], [1], [0, 0, 1, 1], [], []>} : vector<1x32xf32>, vector<32x32xf32>, vector<1x32xf32> -> vector<1x32xf32>
    %228 = arith.addf %227, %50 : vector<1x32xf32>
    %cst_88 = arith.constant dense<0.000000e+00> : vector<1x32xf32>
    %229 = tpu.matmul %226, %48, %cst_88 {dimension_numbers = #tpu.dot_dimension_numbers<[1], [0], [0], [1], [0, 0, 1, 1], [], []>} : vector<1x32xf32>, vector<32x32xf32>, vector<1x32xf32> -> vector<1x32xf32>
    %230 = arith.addf %229, %51 : vector<1x32xf32>
    %cst_89 = arith.constant dense<0.000000e+00> : vector<1x32xf32>
    %231 = tpu.matmul %226, %49, %cst_89 {dimension_numbers = #tpu.dot_dimension_numbers<[1], [0], [0], [1], [0, 0, 1, 1], [], []>} : vector<1x32xf32>, vector<32x32xf32>, vector<1x32xf32> -> vector<1x32xf32>
    %232 = arith.addf %231, %52 : vector<1x32xf32>
    %233 = vector.extract_strided_slice %36 {offsets = [6, 0], sizes = [1, 32], strides = [1, 1]} : vector<8x32xf32> to vector<1x32xf32>
    %234 = arith.addf %233, %228 : vector<1x32xf32>
    %235 = arith.negf %234 : vector<1x32xf32>
    %236 = math.exp %235 : vector<1x32xf32>
    %cst_90 = arith.constant 1.000000e+00 : f32
    %237 = vector.broadcast %cst_90 : f32 to vector<1x32xf32>
    %238 = arith.addf %237, %236 : vector<1x32xf32>
    %239 = arith.divf %237, %238 : vector<1x32xf32>
    %240 = vector.extract_strided_slice %41 {offsets = [6, 0], sizes = [1, 32], strides = [1, 1]} : vector<8x32xf32> to vector<1x32xf32>
    %241 = arith.addf %240, %230 : vector<1x32xf32>
    %242 = arith.negf %241 : vector<1x32xf32>
    %243 = math.exp %242 : vector<1x32xf32>
    %cst_91 = arith.constant 1.000000e+00 : f32
    %244 = vector.broadcast %cst_91 : f32 to vector<1x32xf32>
    %245 = arith.addf %244, %243 : vector<1x32xf32>
    %246 = arith.divf %244, %245 : vector<1x32xf32>
    %247 = vector.extract_strided_slice %46 {offsets = [6, 0], sizes = [1, 32], strides = [1, 1]} : vector<8x32xf32> to vector<1x32xf32>
    %248 = arith.mulf %239, %232 : vector<1x32xf32>
    %249 = arith.addf %247, %248 : vector<1x32xf32>
    %250 = math.tanh %249 : vector<1x32xf32>
    %cst_92 = arith.constant 1.000000e+00 : f32
    %251 = vector.broadcast %cst_92 : f32 to vector<1x32xf32>
    %252 = arith.subf %251, %246 : vector<1x32xf32>
    %253 = arith.mulf %252, %250 : vector<1x32xf32>
    %254 = arith.mulf %246, %226 : vector<1x32xf32>
    %255 = arith.addf %253, %254 : vector<1x32xf32>
    %cst_93 = arith.constant dense<0.000000e+00> : vector<1x32xf32>
    %256 = tpu.matmul %255, %47, %cst_93 {dimension_numbers = #tpu.dot_dimension_numbers<[1], [0], [0], [1], [0, 0, 1, 1], [], []>} : vector<1x32xf32>, vector<32x32xf32>, vector<1x32xf32> -> vector<1x32xf32>
    %257 = arith.addf %256, %50 : vector<1x32xf32>
    %cst_94 = arith.constant dense<0.000000e+00> : vector<1x32xf32>
    %258 = tpu.matmul %255, %48, %cst_94 {dimension_numbers = #tpu.dot_dimension_numbers<[1], [0], [0], [1], [0, 0, 1, 1], [], []>} : vector<1x32xf32>, vector<32x32xf32>, vector<1x32xf32> -> vector<1x32xf32>
    %259 = arith.addf %258, %51 : vector<1x32xf32>
    %cst_95 = arith.constant dense<0.000000e+00> : vector<1x32xf32>
    %260 = tpu.matmul %255, %49, %cst_95 {dimension_numbers = #tpu.dot_dimension_numbers<[1], [0], [0], [1], [0, 0, 1, 1], [], []>} : vector<1x32xf32>, vector<32x32xf32>, vector<1x32xf32> -> vector<1x32xf32>
    %261 = arith.addf %260, %52 : vector<1x32xf32>
    %262 = vector.extract_strided_slice %36 {offsets = [7, 0], sizes = [1, 32], strides = [1, 1]} : vector<8x32xf32> to vector<1x32xf32>
    %263 = arith.addf %262, %257 : vector<1x32xf32>
    %264 = arith.negf %263 : vector<1x32xf32>
    %265 = math.exp %264 : vector<1x32xf32>
    %cst_96 = arith.constant 1.000000e+00 : f32
    %266 = vector.broadcast %cst_96 : f32 to vector<1x32xf32>
    %267 = arith.addf %266, %265 : vector<1x32xf32>
    %268 = arith.divf %266, %267 : vector<1x32xf32>
    %269 = vector.extract_strided_slice %41 {offsets = [7, 0], sizes = [1, 32], strides = [1, 1]} : vector<8x32xf32> to vector<1x32xf32>
    %270 = arith.addf %269, %259 : vector<1x32xf32>
    %271 = arith.negf %270 : vector<1x32xf32>
    %272 = math.exp %271 : vector<1x32xf32>
    %cst_97 = arith.constant 1.000000e+00 : f32
    %273 = vector.broadcast %cst_97 : f32 to vector<1x32xf32>
    %274 = arith.addf %273, %272 : vector<1x32xf32>
    %275 = arith.divf %273, %274 : vector<1x32xf32>
    %276 = vector.extract_strided_slice %46 {offsets = [7, 0], sizes = [1, 32], strides = [1, 1]} : vector<8x32xf32> to vector<1x32xf32>
    %277 = arith.mulf %268, %261 : vector<1x32xf32>
    %278 = arith.addf %276, %277 : vector<1x32xf32>
    %279 = math.tanh %278 : vector<1x32xf32>
    %cst_98 = arith.constant 1.000000e+00 : f32
    %280 = vector.broadcast %cst_98 : f32 to vector<1x32xf32>
    %281 = arith.subf %280, %275 : vector<1x32xf32>
    %282 = arith.mulf %281, %279 : vector<1x32xf32>
    %283 = arith.mulf %275, %255 : vector<1x32xf32>
    %284 = arith.addf %282, %283 : vector<1x32xf32>
    %c0_99 = arith.constant 0 : index
    %c0_100 = arith.constant 0 : index
    %285 = vector.load %arg24[%c0_99, %c0_100] : memref<1x32xf32, #tpu.memory_space<vmem>>, vector<1x32xf32>
    tpu.vector_store %arg24[%c0_99, %c0_100], %284 {strides = array<i32>} : memref<1x32xf32, #tpu.memory_space<vmem>>, vector<1x32xf32>,
    %286 = tpu.concatenate %81, %110, %139, %168, %197, %226, %255, %284 in 0 : vector<1x32xf32>, vector<1x32xf32>, vector<1x32xf32>, vector<1x32xf32>, vector<1x32xf32>, vector<1x32xf32>, vector<1x32xf32>, vector<1x32xf32> -> vector<8x32xf32>
    %c0_101 = arith.constant 0 : index
    %c0_102 = arith.constant 0 : index
    %287 = vector.load %arg21[%c0_101, %c0_102] : memref<32x128xf32, #tpu.memory_space<vmem>>, vector<32x128xf32>
    %cst_103 = arith.constant dense<0.000000e+00> : vector<8x128xf32>
    %288 = tpu.matmul %286, %287, %cst_103 {dimension_numbers = #tpu.dot_dimension_numbers<[1], [0], [0], [1], [0, 0, 1, 1], [], []>} : vector<8x32xf32>, vector<32x128xf32>, vector<8x128xf32> -> vector<8x128xf32>
    %c0_104 = arith.constant 0 : index
    %c0_105 = arith.constant 0 : index
    %289 = vector.load %arg22[%c0_104, %c0_105] : memref<1x128xf32, #tpu.memory_space<vmem>>, vector<1x128xf32>
    %290 = vector.broadcast %289 : vector<1x128xf32> to vector<8x128xf32>
    %291 = arith.addf %288, %290 : vector<8x128xf32>
    %cst_106 = arith.constant dense<0xFF800000> : vector<8xf32>
    %292 = vector.multi_reduction <maximumf>, %291, %cst_106 [1] : vector<8x128xf32> to vector<8xf32>
    %293 = vector.shape_cast %292 : vector<8xf32> to vector<8x1xf32>
    %294 = vector.broadcast %293 : vector<8x1xf32> to vector<8x128xf32>
    %295 = arith.subf %291, %294 : vector<8x128xf32>
    %296 = math.exp %295 : vector<8x128xf32>
    %cst_107 = arith.constant dense<0.000000e+00> : vector<8xf32>
    %297 = vector.multi_reduction <add>, %296, %cst_107 [1] : vector<8x128xf32> to vector<8xf32>
    %298 = vector.shape_cast %297 : vector<8xf32> to vector<8x1xf32>
    %299 = math.log %298 : vector<8x1xf32>
    %300 = arith.addf %293, %299 : vector<8x1xf32>
    %301 = vector.broadcast %300 : vector<8x1xf32> to vector<8x128xf32>
    %302 = arith.subf %291, %301 : vector<8x128xf32>
    %c0_108 = arith.constant 0 : index
    %c0_109 = arith.constant 0 : index
    %303 = vector.load %arg23[%c0_108, %c0_109] : memref<8x128xf32, #tpu.memory_space<vmem>>, vector<8x128xf32>
    tpu.vector_store %arg23[%c0_108, %c0_109], %302 {strides = array<i32>} : memref<8x128xf32, #tpu.memory_space<vmem>>, vector<8x128xf32>,
    return
  }
}

</mosaic_0001>

<bundles_post_ra>
// kernel: attention_decoder_forward.1
= control target key start
LH: loop header
LB: loop body
LE: loop exit
PB: predicated region body
PF: predicated region fallthrough
CT: control target
= control target key end

     0   :  { %s4404_s0 = inlined_call_operand.vmem [shape: f32[8,32], index: 0, kind: input, shape index: {}]   ;;  %s4405_s1 = inlined_call_operand.vmem [shape: f32[1,32], index: 1, kind: input, shape index: {}]   ;;  %s4406_s2 = inlined_call_operand.vmem [shape: f32[25,32], index: 2, kind: input, shape index: {}]   ;;  %s4407_s3 = inlined_call_operand.vmem [shape: f32[32,25], index: 3, kind: input, shape index: {}]   ;;  %s4408_s4 = inlined_call_operand.vmem [shape: f32[32,25], index: 4, kind: input, shape index: {}]   ;;  %s4409_s5 = inlined_call_operand.vmem [shape: f32[1,25], index: 5, kind: input, shape index: {}]   ;;  %s4410_s6 = inlined_call_operand.vmem [shape: f32[32,32], index: 6, kind: input, shape index: {}]   ;;  %s4411_s7 = inlined_call_operand.vmem [shape: f32[32,32], index: 7, kind: input, shape index: {}]   ;;  %s4412_s8 = inlined_call_operand.vmem [shape: f32[1,32], index: 8, kind: input, shape index: {}]   ;;  %s4413_s9 = inlined_call_operand.vmem [shape: f32[32,32], index: 9, kind: input, shape index: {}]   ;;  %s4414_s10 = inlined_call_operand.vmem [shape: f32[32,32], index: 10, kind: input, shape index: {}]   ;;  %s4415_s11 = inlined_call_operand.vmem [shape: f32[32,32], index: 11, kind: input, shape index: {}]   ;;  %s4416_s12 = inlined_call_operand.vmem [shape: f32[1,32], index: 12, kind: input, shape index: {}]   ;;  %s4417_s13 = inlined_call_operand.vmem [shape: f32[1,32], index: 13, kind: input, shape index: {}]   ;;  %s4418_s14 = inlined_call_operand.vmem [shape: f32[1,32], index: 14, kind: input, shape index: {}]   ;;  %s4419_s15 = inlined_call_operand.vmem [shape: f32[32,32], index: 15, kind: input, shape index: {}]   ;;  %s4420_s16 = inlined_call_operand.vmem [shape: f32[32,32], index: 16, kind: input, shape index: {}]   ;;  %s4421_s17 = inlined_call_operand.vmem [shape: f32[32,32], index: 17, kind: input, shape index: {}]   ;;  %s4422_s18 = inlined_call_operand.vmem [shape: f32[1,32], index: 18, kind: input, shape index: {}]   ;;  %s4423_s19 = inlined_call_operand.vmem [shape: f32[1,32], index: 19, kind: input, shape index: {}]   ;;  %s4424_s20 = inlined_call_operand.vmem [shape: f32[1,32], index: 20, kind: input, shape index: {}]   ;;  %s4425_s21 = inlined_call_operand.vmem [shape: f32[32,128], index: 21, kind: input, shape index: {}]   ;;  %s4426_s22 = inlined_call_operand.vmem [shape: f32[1,128], index: 22, kind: input, shape index: {}]   ;;  %s4427_s23 = inlined_call_operand.hbm [shape: f32[8,128], index: 23, kind: output, shape index: {0}]   ;;  %s4428_s24 = inlined_call_operand.hbm [shape: f32[1,32], index: 24, kind: output, shape index: {1}]  }
   0x1   :  { %4434 = sst [smem:[#allocation8_spill]] %s4404_s0 }
   0x2   :  { %4435 = sst [smem:[#allocation9_spill]] %s4405_s1 }
   0x3   :  { %4436 = sst [smem:[#allocation10_spill]] %s4406_s2 }
   0x4   :  { %4437 = sst [smem:[#allocation11_spill]] %s4407_s3 }
   0x5   :  { %4438 = sst [smem:[#allocation12_spill]] %s4408_s4 }
   0x6   :  { %4439 = sst [smem:[#allocation13_spill]] %s4409_s5 }
   0x7   :  { %4440 = sst [smem:[#allocation14_spill]] %s4410_s6 }
   0x8   :  { %4441 = sst [smem:[#allocation15_spill]] %s4411_s7 }
   0x9   :  { %4442 = sst [smem:[#allocation16_spill]] %s4412_s8 }
   0xa   :  { %30 = vsyncpa [#allocation3], 0  ;;  %s4443_s27 = sld [smem:[#allocation12_spill]]  ;;  %s4444_s0 = sld [smem:[#allocation11_spill]]  ;;  %v3769_v3 = vmov 0.0|0.0   ;;  %vm3770_vm0 = vmmov 0  }
   0xb   :  { %3428 = vmatprep.subr.bf16.mxu0 %v3769_v3  ;;  %3434 = vmatprep.subr.bf16.mxu1 %v3769_v3  ;;  %v3771_v9 = vmov 0.0  }
   0xc   :  { %3073 = vmatprep.mubr.msk.f32.mxu0 %vm3770_vm0, %v3771_v9  ;;  %3084 = vmatprep.mubr.msk.f32.mxu1 %vm3770_vm0, %v3771_v9 }
  0x10   :  { %v80_v0 = vld [vmem:[%s4443_s27] sm:$0xff]  ;;  %v81_v1 = vld [vmem:[%s4443_s27 + $0x8] sm:$0xff]  ;;  %v82_v6 = vld [vmem:[%s4443_s27 + $0x10] sm:$0xff] }
  0x11   :  { %v159_v2 = vld [vmem:[%s4444_s0] sm:$0xff]  ;;  %v3429_v4 = vpack.c.bf16 %v81_v1, %v80_v0  ;;  %v160_v5 = vld [vmem:[%s4444_s0 + $0x8] sm:$0xff]  ;;  %v83_v7 = vld [vmem:[%s4443_s27 + $0x18] sm:$0xff] }
  0x12   :  { %v3435_v8 = vpack.c.bf16 %v160_v5, %v159_v2  ;;  %v161_v10 = vld [vmem:[%s4444_s0 + $0x10] sm:$0xff]  ;;  %v162_v11 = vld [vmem:[%s4444_s0 + $0x18] sm:$0xff]  ;;  %v3432_v12 = vpack.c.bf16 %v83_v7, %v82_v6 }
  0x13   :  { %3430 = vmatpush3.bf16.msra.mxu0 %v3429_v4 }
  0x14   :  { %31 = vsyncpa [#allocation5], 0  ;;  %3431 = vmatprep.subr.bf16.mxu0 %v3769_v3  ;;  %3436 = vmatpush3.bf16.msra.mxu1 %v3435_v8  ;;  %v3438_v13 = vpack.c.bf16 %v162_v11, %v161_v10  ;;  %s4445_s2 = sld [smem:[#allocation9_spill]]  ;;  %vm85_vm1 = vcmask 261120   ;;  %s4446_s7 = sld [smem:[#allocation8_spill]]  ;;  %v163_v16 = vlaneseq  ;;  %vm240_vm2 = vcmask 203776  }
  0x15   :  { %3437 = vmatprep.subr.bf16.mxu1 %v3769_v3  ;;  %s4447_s25 = sld [smem:[#allocation13_spill]]  ;;  %s4448_s1 = sld [smem:[#allocation10_spill]]  ;;  %vm259_vm3 = vcmask 1040384   ;;  %vm3772_vm4 = vmmov 1   ;;  %v493_v54 = vld [vmem:[%s4413_s9] sm:$0xff]  ;;  %v494_v55 = vld [vmem:[%s4413_s9 + $0x8] sm:$0xff] }
  0x16   :  { %v164_v17 = vshrl.u32 %v163_v16, 7  ;;  %vm3445_vm5 = vmpackc.low %vm259_vm3, %vm3772_vm4  ;;  %s4450_s28 = sld [smem:[#allocation14_spill]]  ;;  %v3460_v56 = vpack.c.bf16 %v494_v55, %v493_v54  ;;  %v577_v59 = vld [vmem:[%s4414_s10] sm:$0xff]  ;;  %v578_v60 = vld [vmem:[%s4414_s10 + $0x8] sm:$0xff]  ;;  %vm2709_vm6 = vcmask 1041408   ;;  %vm2711_vm7 = vcmask 1042432  }
  0x17   :  { %3433 = vmatpush3.bf16.msra.mxu0 %v3432_v12  ;;  %v3466_v61 = vpack.c.bf16 %v578_v60, %v577_v59  ;;  %v495_v0 = vld [vmem:[%s4413_s9 + $0x10] sm:$0xff]  ;;  %v496_v1 = vld [vmem:[%s4413_s9 + $0x18] sm:$0xff]  ;;  %s4451_s9 = sld [smem:[#allocation16_spill]]  ;;  %v658_v10 = vld [vmem:[%s4415_s11] sm:$0xff]  ;;  %vm2713_vm8 = vcmask 1043456   ;;  %vm2715_vm9 = vcmask 1044480  }
  0x18   :  { %3439 = vmatpush3.bf16.msra.mxu1 %v3438_v13  ;;  %3440 = vmatprep.subr.bf16.mxu0 %v3769_v3  ;;  %v165_v19 = vsub.s32 0, %v164_v17  ;;  %v579_v2 = vld [vmem:[%s4414_s10 + $0x10] sm:$0xff]  ;;  %v3463_v4 = vpack.c.bf16 %v496_v1, %v495_v0  ;;  %v580_v5 = vld [vmem:[%s4414_s10 + $0x18] sm:$0xff]  ;;  %v659_v13 = vld [vmem:[%s4415_s11 + $0x8] sm:$0xff]  ;;  %vm2717_vm10 = vcmask 1045504   ;;  %vm2719_vm11 = vcmask 1046528  }
  0x19   :  { %3447 = vmatprep.subr.bf16.mxu1 %v3769_v3  ;;  %v3469_v6 = vpack.c.bf16 %v580_v5, %v579_v2  ;;  %v740_v16 = vld [vmem:[%s4419_s15 + $0x8] sm:$0xff]  ;;  %v4158_v54 = vld [vmem:[%s4423_s19] sm:$0x1]  ;;  %vm2706_vm12 = vcmask 261127   ;;  %s3773_s27 = smov [#allocation4]  }
  0x1a   :  { %v3935_v14 = vld [vmem:[%s4445_s2] sm:$0x1]  ;;  %s2833_s6 = sshll.u32 %s3773_s27, 4  ;;  %s2834_s6 = int_to_ptr.vmem [resolvable:$true] %s2833_s6 }
  0x1b   :  { %v78_v15 = vld [vmem:[%s4446_s7] sm:$0xff]  ;;  %3074 = vmatmul.mubr.msk.f32.vlgmr.msra.gmra.mrb[0].mxu0 %vm85_vm1, %v3935_v14  ;;  %v253_v34 = vld [vmem:[%s4448_s1 + $0x8] sm:$0xff]  ;;  %v254_v36 = vld [vmem:[%s4448_s1 + $0x10] sm:$0xff]  ;;  %s4449_s7 = sld [smem:[#allocation15_spill]]  ;;  %s3721_s2 = scalar_lea.vmem %s2834_s6, 16 }
  0x1c   :  { %3085 = vmatmul.mubr.msk.f32.vlgmr.msra.gmra.mrb[0].mxu1 %vm85_vm1, %v78_v15  ;;  %3095 = vmatprep.mubr.msk.f32.mxu0 %vm3770_vm0, %v3771_v9  ;;  %v84_v18 = vld [vmem:[%s4447_s25] sm:$0x1]  ;;  %v255_v37 = vld [vmem:[%s4448_s1 + $0x18] sm:$0x1]  ;;  %v334_v47 = vld [vmem:[%s4450_s28 + $0x8] sm:$0xff]  ;;  %p3722_p0 = scmp.ne.s32.totalorder %s2834_s6, %s3721_s2  ;;  %s3725_s29 = scalar_lea.vmem %s2834_s6, 32 }
  0x1d   :  { %3106 = vmatprep.mubr.msk.f32.mxu1 %vm3770_vm0, %v3771_v9  ;;  %v252_v33 = vld [vmem:[%s4448_s1] sm:$0xff]  ;;  %v3444_v38 = vpack.c.bf16 %v255_v37, %v254_v36  ;;  %v335_v51 = vld [vmem:[%s4450_s28 + $0x10] sm:$0xff]  ;;  %v336_v52 = vld [vmem:[%s4450_s28 + $0x18] sm:$0xff]  ;;  %p3726_p1 = scmp.lt.s32.totalorder %s2834_s6, %s2834_s6  ;;  %p3727_p2 = scmp.lt.s32.totalorder %s3725_s29, %s3721_s2 }
  0x1e   :  { %v3441_v35 = vpack.c.bf16 %v253_v34, %v252_v33  ;;  %v333_v46 = vld [vmem:[%s4450_s28] sm:$0xff]  ;;  %v3457_v53 = vpack.c.bf16 %v336_v52, %v335_v51  ;;  %v746_v33 = vld [vmem:[%s4420_s16 + $0x18] sm:$0xff] }
  0x1f   :  { %v3454_v49 = vpack.c.bf16 %v334_v47, %v333_v46  ;;  %v2851_v8 = vld [vmem:[%s4451_s9] ss:$0 sm:$0xff]  ;;  %v750_v36 = vld [vmem:[%s4421_s17 + $0x18] sm:$0xff]  ;;  %p3728_p3 = por %p3727_p2, %p3726_p1 }
  0x20   :  { %3442 = vmatpush3.bf16.msra.mxu0 %v3441_v35  ;;  %v749_v35 = vld [vmem:[%s4421_s17 + $0x10] sm:$0xff]  ;;  %v4167_v1 = vld [vmem:[%s4424_s20] sm:$0x1] }
  0x21   :  { %3443 = vmatprep.subr.bf16.mxu0 %v3769_v3  ;;  %v337_v39 = vld [vmem:[%s4449_s7] sm:$0xff]  ;;  %v338_v40 = vld [vmem:[%s4449_s7 + $0x8] sm:$0xff]  ;;  %v339_v42 = vld [vmem:[%s4449_s7 + $0x10] sm:$0xff]  ;;  %p3729_p4 = pnand %p3728_p3, %p3722_p0 }
  0x22   :  { %v3448_v41 = vpack.c.bf16 %v338_v40, %v337_v39  ;;  %v340_v43 = vld [vmem:[%s4449_s7 + $0x18] sm:$0xff] }
  0x23   :  { %v3451_v44 = vpack.c.bf16 %v340_v43, %v339_v42  ;;  %v2852_v43 = vld [vmem:[%s4416_s12] ss:$0 sm:$0xff] }
  0x24   :  { %3446 = vmatpush3.bf16.msk.msra.mxu0 %vm3445_vm5, %v3444_v38  ;;  %3449 = vmatpush3.bf16.msra.mxu1 %v3448_v41  ;;  %v4115_v38 = vpack.c.bf16 %v750_v36, %v749_v35 }
  0x25   :  { %3453 = vmatprep.subr.bf16.mxu0 %v3769_v3  ;;  %3450 = vmatprep.subr.bf16.mxu1 %v3769_v3 }
  0x28   :  { %3452 = vmatpush3.bf16.msra.mxu1 %v3451_v44  ;;  %v4146_v44 = vld [vmem:[%s4422_s18] sm:$0x1] }
  0x29   :  { %3459 = vmatprep.subr.bf16.mxu1 %v3769_v3 }
  0x2b   :  { %3107 = vmatmul.mubr.msk.f32.vlgmr.msra.gmra.mrb[2].mxu1 %vm85_vm1, %v78_v15  ;;  %v739_v15 = vld [vmem:[%s4419_s15] sm:$0xff] }
  0x2c   :  { %3128 = vmatprep.mubr.msk.f32.mxu1 %vm3770_vm0, %v3771_v9  ;;  %3461 = vmatpush3.bf16.msra.mxu1 %v3460_v56 }
  0x2d   :  { %3462 = vmatprep.subr.bf16.mxu1 %v3769_v3 }
  0x30   :  { %3464 = vmatpush3.bf16.msra.mxu1 %v3463_v4 }
  0x31   :  { %3471 = vmatprep.subr.bf16.mxu1 %v3769_v3 }
  0xee   :  { %v155_v20 = vpop.f32.mrb[0].mxu0 }
  0xef   :  { %v156_v21 = vadd.f32 %v155_v20, %v84_v18  ;;  %v3075_v22 = vpop.f32.mrb[1].mxu0  ;;  %v236_v23 = vpop.f32.mrb[0].mxu1  ;;  %v3472_v18 = vpack.c.bf16 %v659_v13, %v658_v10  ;;  %v660_v20 = vld [vmem:[%s4415_s11 + $0x10] sm:$0xff] }
  0xf0   :  { %v3086_v24 = vpop.f32.mrb[1].mxu1  ;;  %v661_v22 = vld [vmem:[%s4415_s11 + $0x18] sm:$0xff] }
  0xf1   :  { %v166_v25 = vrot.slane %v156_v21, %v165_v19  ;;  %v4049_v19 = vpack.c.bf16 %v740_v16, %v739_v15  ;;  %v742_v24 = vld [vmem:[%s4419_s15 + $0x18] sm:$0xff] }
  0xf3   :  { %v237_v26 = vadd.f32 %v236_v23, %v166_v25  ;;  %v741_v23 = vld [vmem:[%s4419_s15 + $0x10] sm:$0xff]  ;;  %v3475_v25 = vpack.c.bf16 %v661_v22, %v660_v20 }
  0xf5   :  { %v241_v27 = vsel %vm240_vm2, %v237_v26, -inf }
  0xf6   :  { %242 = vmax.xlane.f32.xlu0 %v241_v27  ;;  %v743_v27 = vld [vmem:[%s4420_s16] sm:$0xff] }
  0xfe   :  { %v407_v57 = vpop.f32.mrb[2].mxu1 }
  0xff   :  { %v3108_v58 = vpop.f32.mrb[3].mxu1 }
 0x183   :  { %v243_v28 = vpop.xlane.xlu0 %242 }
 0x184   :  { %v244_v29 = vsub.f32 %v237_v26, %v243_v28  ;;  %v4066_v26 = vpack.c.bf16 %v742_v24, %v741_v23  ;;  %v744_v28 = vld [vmem:[%s4420_s16 + $0x8] sm:$0xff] }
 0x186   :  { %v245_v30 = vmul.f32 1.442695, %v244_v29  ;;  %v747_v29 = vld [vmem:[%s4421_s17] sm:$0xff] }
 0x188   :  { %3633 = vpow2.f32 %v245_v30  ;;  %v748_v30 = vld [vmem:[%s4421_s17 + $0x8] sm:$0xff] }
 0x189   :  { %v4097_v34 = vpack.c.bf16 %v748_v30, %v747_v29 }
 0x192   :  { %v3634_v31 = vpop.eup %3633 }
 0x193   :  { %v247_v32 = vsel %vm240_vm2, %v3634_v31, 0.0 }
 0x194   :  { %248 = vadd.xlane.f32.xlu0 %v247_v32  ;;  %v745_v32 = vld [vmem:[%s4420_s16 + $0x10] sm:$0xff] }
 0x195   :  { %v4109_v37 = vpack.c.bf16 %v746_v33, %v745_v32 }
 0x221   :  { %v249_v45 = vpop.xlane.xlu0 %248 }
 0x222   :  { %3635 = vrcp.f32 %v249_v45 }
 0x22c   :  { %v3636_v48 = vpop.eup %3635 }
 0x22d   :  { %v251_v50 = vmul.f32 %v3636_v48, %v3634_v31  ;;  %v4087_v31 = vpack.c.bf16 %v744_v28, %v743_v27 }
 0x22f   :  { %3096 = vmatmul.mubr.msk.f32.vlgmr.msra.gmra.mrb[2].mxu0 %vm240_vm2, %v251_v50 }
 0x230   :  { %3455 = vmatpush3.bf16.msra.mxu0 %v3454_v49  ;;  %3117 = vmatprep.mubr.msk.f32.mxu0 %vm3770_vm0, %v3771_v9 }
 0x231   :  { %3456 = vmatprep.subr.bf16.mxu0 %v3769_v3 }
 0x234   :  { %3458 = vmatpush3.bf16.msra.mxu0 %v3457_v53  ;;  %v2854_v53 = vld [vmem:[%s4417_s13] ss:$0 sm:$0xff] }
 0x235   :  { %3465 = vmatprep.subr.bf16.mxu0 %v3769_v3 }
 0x302   :  { %v329_v62 = vpop.f32.mrb[2].mxu0 }
 0x303   :  { %v3097_v63 = vpop.f32.mrb[3].mxu0  ;;  %3118 = vmatmul.mubr.msk.f32.vlgmr.msra.gmra.mrb[4].mxu0 %vm85_vm1, %v329_v62 }
 0x304   :  { %3467 = vmatpush3.bf16.msra.mxu0 %v3466_v61  ;;  %3139 = vmatprep.mubr.msk.f32.mxu0 %vm3770_vm0, %v3771_v9 }
 0x305   :  { %3468 = vmatprep.subr.bf16.mxu0 %v3769_v3 }
 0x308   :  { %3470 = vmatpush3.bf16.msra.mxu0 %v3469_v6  ;;  %v2856_v6 = vld [vmem:[%s4418_s14] ss:$0 sm:$0xff] }
 0x309   :  { %3477 = vmatprep.subr.bf16.mxu0 %v3769_v3 }
 0x3d6   :  { %v480_v7 = vpop.f32.mrb[4].mxu0 }
 0x3d7   :  { %v481_v11 = vadd.f32 %v480_v7, %v407_v57  ;;  %v3119_v12 = vpop.f32.mrb[5].mxu0 }
 0x3d9   :  { %v491_v17 = vadd.f32 %v2851_v8, %v481_v11 }
 0x3db   :  { %v492_v21 = vmax.f32 %v491_v17, 0.0 }
 0x3dd   :  { %3129 = vmatmul.mubr.msk.f32.vlgmr.msra.gmra.mrb[4].mxu1 %vm85_vm1, %v492_v21  ;;  %3140 = vmatmul.mubr.msk.f32.vlgmr.msra.gmra.mrb[6].mxu0 %vm85_vm1, %v492_v21 }
 0x3de   :  { %3473 = vmatpush3.bf16.msra.mxu1 %v3472_v18  ;;  %3479 = vmatpush3.bf16.msra.mxu0 %v4049_v19 }
 0x3df   :  { %3474 = vmatprep.subr.bf16.mxu1 %v3769_v3  ;;  %3480 = vmatprep.subr.bf16.mxu0 %v3769_v3 }
 0x3e0   :  { %3150 = vmatprep.mubr.msk.f32.mxu1 %vm3770_vm0, %v3771_v9  ;;  %3161 = vmatprep.mubr.msk.f32.mxu0 %vm3770_vm0, %v3771_v9 }
 0x3e2   :  { %3476 = vmatpush3.bf16.msra.mxu1 %v3475_v25  ;;  %3482 = vmatpush3.bf16.msra.mxu0 %v4066_v26 }
 0x3e3   :  { %3483 = vmatprep.subr.bf16.mxu1 %v3769_v3  ;;  %3489 = vmatprep.subr.bf16.mxu0 %v3769_v3 }
 0x3e5   :  { %3151 = vmatmul.mubr.msk.f32.vlgmr.msra.gmra.mrb[6].mxu1 %vm85_vm1, %v492_v21  ;;  %3162 = vmatmul.mubr.msk.f32.vlgmr.msra.gmra.mrb[8].mxu0 %vm85_vm1, %v3935_v14 }
 0x3e6   :  { %3485 = vmatpush3.bf16.msra.mxu1 %v4087_v31  ;;  %3172 = vmatprep.mubr.msk.f32.mxu1 %vm3770_vm0, %v3771_v9 }
 0x3e7   :  { %3486 = vmatprep.subr.bf16.mxu1 %v3769_v3  ;;  %3491 = vmatpush3.bf16.msra.mxu0 %v4097_v34 }
 0x3e8   :  { %3492 = vmatprep.subr.bf16.mxu0 %v3769_v3  ;;  %3183 = vmatprep.mubr.msk.f32.mxu0 %vm3770_vm0, %v3771_v9 }
 0x3ea   :  { %3488 = vmatpush3.bf16.msra.mxu1 %v4109_v37 }
 0x3eb   :  { %3494 = vmatpush3.bf16.msra.mxu0 %v4115_v38  ;;  %3495 = vmatprep.subr.bf16.mxu1 %v3769_v3 }
 0x3ec   :  { %3501 = vmatprep.subr.bf16.mxu0 %v3769_v3 }
 0x3ed   :  { %3173 = vmatmul.mubr.msk.f32.vlgmr.msra.gmra.mrb[8].mxu1 %vm85_vm1, %v3935_v14 }
 0x3ee   :  { %3184 = vmatmul.mubr.msk.f32.vlgmr.msra.gmra.mrb[10].mxu0 %vm85_vm1, %v3935_v14  ;;  %3497 = vmatpush3.bf16.msra.mxu1 %v4049_v19 }
 0x3ef   :  { %3503 = vmatpush3.bf16.msra.mxu0 %v4087_v31  ;;  %3498 = vmatprep.subr.bf16.mxu1 %v3769_v3 }
 0x3f0   :  { %3504 = vmatprep.subr.bf16.mxu0 %v3769_v3  ;;  %3194 = vmatprep.mubr.msk.f32.mxu1 %vm3770_vm0, %v3771_v9 }
 0x3f1   :  { %3205 = vmatprep.mubr.msk.f32.mxu0 %vm3770_vm0, %v3771_v9 }
 0x3f2   :  { %3500 = vmatpush3.bf16.msra.mxu1 %v4066_v26 }
 0x3f3   :  { %3506 = vmatpush3.bf16.msra.mxu0 %v4109_v37  ;;  %3507 = vmatprep.subr.bf16.mxu1 %v3769_v3 }
 0x3f4   :  { %3513 = vmatprep.subr.bf16.mxu0 %v3769_v3 }
 0x4b0   :  { %v573_v39 = vpop.f32.mrb[4].mxu1  ;;  %v654_v40 = vpop.f32.mrb[6].mxu0 }
 0x4b1   :  { %v3130_v41 = vpop.f32.mrb[5].mxu1  ;;  %v3141_v42 = vpop.f32.mrb[7].mxu0  ;;  %v4148_v47 = vadd.f32 %v2852_v43, %v573_v39  ;;  %v4160_v56 = vadd.f32 %v2854_v53, %v654_v40 }
 0x4b8   :  { %v735_v45 = vpop.f32.mrb[6].mxu1  ;;  %v820_v46 = vpop.f32.mrb[8].mxu0 }
 0x4b9   :  { %v821_v48 = vadd.f32 %v820_v46, %v4146_v44  ;;  %v3152_v49 = vpop.f32.mrb[7].mxu1  ;;  %v3163_v50 = vpop.f32.mrb[9].mxu0  ;;  %v4173_v8 = vadd.f32 %v2856_v6, %v735_v45 }
 0x4bb   :  { %v964_v51 = vadd.f32 %v821_v48, %v4148_v47 }
 0x4bd   :  { %v2861_v52 = vmul.f32 -1.442695, %v964_v51 }
 0x4bf   :  { %3637 = vpow2.f32 %v2861_v52 }
 0x4c0   :  { %v890_v55 = vpop.f32.mrb[8].mxu1 }
 0x4c1   :  { %v891_v57 = vadd.f32 %v890_v55, %v4158_v54  ;;  %v3174_v58 = vpop.f32.mrb[9].mxu1  ;;  %v960_v59 = vpop.f32.mrb[10].mxu0 }
 0x4c2   :  { %v3185_v60 = vpop.f32.mrb[11].mxu0  ;;  %v961_v5 = vadd.f32 %v960_v59, %v4167_v1 }
 0x4c3   :  { %v971_v61 = vadd.f32 %v891_v57, %v4160_v56 }
 0x4c5   :  { %v2862_v62 = vmul.f32 -1.442695, %v971_v61 }
 0x4c7   :  { %3639 = vpow2.f32 %v2862_v62 }
 0x4c9   :  { %v3638_v63 = vpop.eup %3637 }
 0x4ca   :  { %v968_v0 = vadd.f32 1.0, %v3638_v63 }
 0x4cc   :  { %3641 = vrcp.f32 %v968_v0 }
 0x4d1   :  { %v3640_v2 = vpop.eup %3639 }
 0x4d2   :  { %v975_v4 = vadd.f32 1.0, %v3640_v2 }
 0x4d4   :  { %3643 = vrcp.f32 %v975_v4 }
 0x4d6   :  { %v3642_v7 = vpop.eup %3641 }
 0x4d7   :  { %v978_v10 = vmul.f32 %v3642_v7, %v961_v5 }
 0x4d9   :  { %v979_v11 = vadd.f32 %v978_v10, %v4173_v8 }
 0x4db   :  { %3645 = vtanh.f32 %v979_v11 }
 0x4de   :  { %v3644_v12 = vpop.eup %3643 }
 0x4df   :  { %v981_v13 = vsub.f32 1.0, %v3644_v12  ;;  %v983_v17 = vmul.f32 %v3644_v12, %v3935_v14 }
 0x4e5   :  { %v3646_v15 = vpop.eup %3645 }
 0x4e6   :  { %v982_v16 = vmul.f32 %v3646_v15, %v981_v13 }
 0x4e8   :  { %v4177_v18 = vadd.f32 %v983_v17, %v982_v16 }
 0x4ea   :  { %3195 = vmatmul.mubr.msk.f32.vlgmr.msra.gmra.mrb[10].mxu1 %vm85_vm1, %v4177_v18  ;;  %3206 = vmatmul.mubr.msk.f32.vlgmr.msra.gmra.mrb[12].mxu0 %vm85_vm1, %v4177_v18  ;;  %v1226_v51 = vrot.slane %v4177_v18, 7 }
 0x4eb   :  { %3509 = vmatpush3.bf16.msra.mxu1 %v4097_v34  ;;  %3216 = vmatprep.mubr.msk.f32.mxu1 %vm3770_vm0, %v3771_v9 }
 0x4ec   :  { %3510 = vmatprep.subr.bf16.mxu1 %v3769_v3  ;;  %3515 = vmatpush3.bf16.msra.mxu0 %v4049_v19 }
 0x4ed   :  { %3516 = vmatprep.subr.bf16.mxu0 %v3769_v3  ;;  %3227 = vmatprep.mubr.msk.f32.mxu0 %vm3770_vm0, %v3771_v9 }
 0x4ef   :  { %3512 = vmatpush3.bf16.msra.mxu1 %v4115_v38 }
 0x4f0   :  { %3519 = vmatprep.subr.bf16.mxu1 %v3769_v3  ;;  %3518 = vmatpush3.bf16.msra.mxu0 %v4066_v26 }
 0x4f1   :  { %3525 = vmatprep.subr.bf16.mxu0 %v3769_v3 }
 0x4f2   :  { %3217 = vmatmul.mubr.msk.f32.vlgmr.msra.gmra.mrb[12].mxu1 %vm85_vm1, %v4177_v18 }
 0x4f3   :  { %3521 = vmatpush3.bf16.msra.mxu1 %v4087_v31  ;;  %3238 = vmatprep.mubr.msk.f32.mxu1 %vm3770_vm0, %v3771_v9 }
 0x4f4   :  { %3522 = vmatprep.subr.bf16.mxu1 %v3769_v3 }
 0x4f7   :  { %3524 = vmatpush3.bf16.msra.mxu1 %v4109_v37 }
 0x4f8   :  { %3531 = vmatprep.subr.bf16.mxu1 %v3769_v3 }
 0x5bd   :  { %v1054_v14 = vpop.f32.mrb[10].mxu1  ;;  %v1124_v20 = vpop.f32.mrb[12].mxu0 }
 0x5be   :  { %v1055_v21 = vadd.f32 %v1054_v14, %v4146_v44  ;;  %v1125_v22 = vadd.f32 %v1124_v20, %v4158_v54  ;;  %v3196_v23 = vpop.f32.mrb[11].mxu1  ;;  %v3207_v24 = vpop.f32.mrb[13].mxu0 }
 0x5c0   :  { %v1199_v25 = vrot.slane %v1055_v21, 7  ;;  %v1209_v27 = vrot.slane %v1125_v22, 7 }
 0x5c2   :  { %v1201_v28 = vadd.f32 %v1199_v25, %v4148_v47  ;;  %v1211_v30 = vadd.f32 %v1209_v27, %v4160_v56 }
 0x5c4   :  { %v2866_v29 = vmul.f32 -1.442695, %v1201_v28  ;;  %v2867_v35 = vmul.f32 -1.442695, %v1211_v30 }
 0x5c5   :  { %v1194_v32 = vpop.f32.mrb[12].mxu1 }
 0x5c6   :  { %3647 = vpow2.f32 %v2866_v29  ;;  %v3218_v33 = vpop.f32.mrb[13].mxu1  ;;  %v1195_v41 = vadd.f32 %v1194_v32, %v4167_v1 }
 0x5c7   :  { %3649 = vpow2.f32 %v2867_v35 }
 0x5c8   :  { %v1219_v43 = vrot.slane %v1195_v41, 7 }
 0x5d0   :  { %v3648_v36 = vpop.eup %3647 }
 0x5d1   :  { %v1205_v39 = vadd.f32 1.0, %v3648_v36  ;;  %v3650_v40 = vpop.eup %3649 }
 0x5d2   :  { %v1215_v42 = vadd.f32 1.0, %v3650_v40 }
 0x5d3   :  { %3651 = vrcp.f32 %v1205_v39 }
 0x5d4   :  { %3653 = vrcp.f32 %v1215_v42 }
 0x5dd   :  { %v3652_v45 = vpop.eup %3651 }
 0x5de   :  { %v1221_v46 = vmul.f32 %v3652_v45, %v1219_v43  ;;  %v3654_v49 = vpop.eup %3653 }
 0x5df   :  { %v1224_v50 = vsub.f32 1.0, %v3654_v49  ;;  %v1228_v53 = vmul.f32 %v3654_v49, %v1226_v51 }
 0x5e0   :  { %v1222_v48 = vadd.f32 %v1221_v46, %v4173_v8 }
 0x5e2   :  { %3655 = vtanh.f32 %v1222_v48 }
 0x5ec   :  { %v3656_v52 = vpop.eup %3655 }
 0x5ed   :  { %v1225_v55 = vmul.f32 %v3656_v52, %v1224_v50 }
 0x5ef   :  { %v1229_v57 = vadd.f32 %v1228_v53, %v1225_v55 }
 0x5f1   :  { %v1231_v58 = vrot.slane %v1229_v57, 1  ;;  %v1472_v22 = vrot.slane %v1229_v57, 7  ;;  %v2708_v33 = vsel %vm259_vm3, %v4177_v18, %v1229_v57 }
 0x5f3   :  { %3228 = vmatmul.mubr.msk.f32.vlgmr.msra.gmra.mrb[14].mxu0 %vm85_vm1, %v1231_v58  ;;  %3239 = vmatmul.mubr.msk.f32.vlgmr.msra.gmra.mrb[14].mxu1 %vm85_vm1, %v1231_v58 }
 0x5f4   :  { %3527 = vmatpush3.bf16.msra.mxu0 %v4097_v34  ;;  %3249 = vmatprep.mubr.msk.f32.mxu0 %vm3770_vm0, %v3771_v9 }
 0x5f5   :  { %3528 = vmatprep.subr.bf16.mxu0 %v3769_v3  ;;  %3533 = vmatpush3.bf16.msra.mxu1 %v4049_v19 }
 0x5f6   :  { %3534 = vmatprep.subr.bf16.mxu1 %v3769_v3  ;;  %3260 = vmatprep.mubr.msk.f32.mxu1 %vm3770_vm0, %v3771_v9 }
 0x5f8   :  { %3530 = vmatpush3.bf16.msra.mxu0 %v4115_v38 }
 0x5f9   :  { %3537 = vmatprep.subr.bf16.mxu0 %v3769_v3  ;;  %3536 = vmatpush3.bf16.msra.mxu1 %v4066_v26 }
 0x5fa   :  { %3543 = vmatprep.subr.bf16.mxu1 %v3769_v3 }
 0x5fb   :  { %3250 = vmatmul.mubr.msk.f32.vlgmr.msra.gmra.mrb[16].mxu0 %vm85_vm1, %v1231_v58 }
 0x5fc   :  { %3539 = vmatpush3.bf16.msra.mxu0 %v4087_v31  ;;  %3271 = vmatprep.mubr.msk.f32.mxu0 %vm3770_vm0, %v3771_v9 }
 0x5fd   :  { %3540 = vmatprep.subr.bf16.mxu0 %v3769_v3 }
 0x600   :  { %3542 = vmatpush3.bf16.msra.mxu0 %v4109_v37 }
 0x601   :  { %3549 = vmatprep.subr.bf16.mxu0 %v3769_v3 }
 0x6c6   :  { %v1300_v59 = vpop.f32.mrb[14].mxu0  ;;  %v1370_v60 = vpop.f32.mrb[14].mxu1 }
 0x6c7   :  { %v1301_v61 = vadd.f32 %v1300_v59, %v4146_v44  ;;  %v1371_v62 = vadd.f32 %v1370_v60, %v4158_v54  ;;  %v3229_v63 = vpop.f32.mrb[15].mxu0  ;;  %v3240_v0 = vpop.f32.mrb[15].mxu1 }
 0x6c9   :  { %v1445_v2 = vrot.slane %v1301_v61, 6  ;;  %v1455_v4 = vrot.slane %v1371_v62, 6 }
 0x6cb   :  { %v1447_v5 = vadd.f32 %v1445_v2, %v4148_v47  ;;  %v1457_v6 = vadd.f32 %v1455_v4, %v4160_v56 }
 0x6cd   :  { %v2871_v7 = vmul.f32 -1.442695, %v1447_v5  ;;  %v2872_v10 = vmul.f32 -1.442695, %v1457_v6 }
 0x6ce   :  { %v1440_v11 = vpop.f32.mrb[16].mxu0 }
 0x6cf   :  { %3657 = vpow2.f32 %v2871_v7  ;;  %v3251_v12 = vpop.f32.mrb[17].mxu0  ;;  %v1441_v14 = vadd.f32 %v1440_v11, %v4167_v1 }
 0x6d0   :  { %3659 = vpow2.f32 %v2872_v10 }
 0x6d1   :  { %v1465_v20 = vrot.slane %v1441_v14, 6 }
 0x6d9   :  { %v3658_v13 = vpop.eup %3657 }
 0x6da   :  { %v3660_v15 = vpop.eup %3659  ;;  %v1451_v16 = vadd.f32 1.0, %v3658_v13 }
 0x6db   :  { %v1461_v17 = vadd.f32 1.0, %v3660_v15 }
 0x6dc   :  { %3661 = vrcp.f32 %v1451_v16 }
 0x6dd   :  { %3663 = vrcp.f32 %v1461_v17 }
 0x6e6   :  { %v3662_v21 = vpop.eup %3661 }
 0x6e7   :  { %v3664_v23 = vpop.eup %3663  ;;  %v1467_v24 = vmul.f32 %v3662_v21, %v1465_v20 }
 0x6e8   :  { %v1474_v25 = vmul.f32 %v3664_v23, %v1472_v22  ;;  %v1470_v28 = vsub.f32 1.0, %v3664_v23 }
 0x6e9   :  { %v1468_v27 = vadd.f32 %v1467_v24, %v4173_v8 }
 0x6eb   :  { %3665 = vtanh.f32 %v1468_v27 }
 0x6f5   :  { %v3666_v29 = vpop.eup %3665 }
 0x6f6   :  { %v1471_v30 = vmul.f32 %v3666_v29, %v1470_v28 }
 0x6f8   :  { %v1475_v32 = vadd.f32 %v1474_v25, %v1471_v30 }
 0x6fa   :  { %v1477_v35 = vrot.slane %v1475_v32, 2  ;;  %v2710_v36 = vsel %vm2709_vm6, %v2708_v33, %v1475_v32  ;;  %v1718_v63 = vrot.slane %v1475_v32, 7 }
 0x6fc   :  { %3261 = vmatmul.mubr.msk.f32.vlgmr.msra.gmra.mrb[16].mxu1 %vm85_vm1, %v1477_v35  ;;  %3272 = vmatmul.mubr.msk.f32.vlgmr.msra.gmra.mrb[18].mxu0 %vm85_vm1, %v1477_v35 }
 0x6fd   :  { %3545 = vmatpush3.bf16.msra.mxu1 %v4097_v34  ;;  %3282 = vmatprep.mubr.msk.f32.mxu1 %vm3770_vm0, %v3771_v9 }
 0x6fe   :  { %3546 = vmatprep.subr.bf16.mxu1 %v3769_v3  ;;  %3551 = vmatpush3.bf16.msra.mxu0 %v4049_v19 }
 0x6ff   :  { %3552 = vmatprep.subr.bf16.mxu0 %v3769_v3  ;;  %3293 = vmatprep.mubr.msk.f32.mxu0 %vm3770_vm0, %v3771_v9 }
 0x701   :  { %3548 = vmatpush3.bf16.msra.mxu1 %v4115_v38 }
 0x702   :  { %3555 = vmatprep.subr.bf16.mxu1 %v3769_v3  ;;  %3554 = vmatpush3.bf16.msra.mxu0 %v4066_v26 }
 0x703   :  { %3561 = vmatprep.subr.bf16.mxu0 %v3769_v3 }
 0x704   :  { %3283 = vmatmul.mubr.msk.f32.vlgmr.msra.gmra.mrb[18].mxu1 %vm85_vm1, %v1477_v35 }
 0x705   :  { %3557 = vmatpush3.bf16.msra.mxu1 %v4087_v31  ;;  %3304 = vmatprep.mubr.msk.f32.mxu1 %vm3770_vm0, %v3771_v9 }
 0x706   :  { %3558 = vmatprep.subr.bf16.mxu1 %v3769_v3 }
 0x709   :  { %3560 = vmatpush3.bf16.msra.mxu1 %v4109_v37 }
 0x70a   :  { %3567 = vmatprep.subr.bf16.mxu1 %v3769_v3 }
 0x7cf   :  { %v1546_v18 = vpop.f32.mrb[16].mxu1  ;;  %v1616_v39 = vpop.f32.mrb[18].mxu0 }
 0x7d0   :  { %v1547_v40 = vadd.f32 %v1546_v18, %v4146_v44  ;;  %v1617_v41 = vadd.f32 %v1616_v39, %v4158_v54  ;;  %v3262_v42 = vpop.f32.mrb[17].mxu1  ;;  %v3273_v43 = vpop.f32.mrb[19].mxu0 }
 0x7d2   :  { %v1691_v45 = vrot.slane %v1547_v40, 5  ;;  %v1701_v46 = vrot.slane %v1617_v41, 5 }
 0x7d4   :  { %v1693_v48 = vadd.f32 %v1691_v45, %v4148_v47  ;;  %v1703_v49 = vadd.f32 %v1701_v46, %v4160_v56 }
 0x7d6   :  { %v2876_v50 = vmul.f32 -1.442695, %v1693_v48  ;;  %v2877_v51 = vmul.f32 -1.442695, %v1703_v49 }
 0x7d7   :  { %v1686_v52 = vpop.f32.mrb[18].mxu1 }
 0x7d8   :  { %3667 = vpow2.f32 %v2876_v50  ;;  %v3284_v53 = vpop.f32.mrb[19].mxu1  ;;  %v1687_v60 = vadd.f32 %v1686_v52, %v4167_v1 }
 0x7d9   :  { %3669 = vpow2.f32 %v2877_v51 }
 0x7da   :  { %v1711_v61 = vrot.slane %v1687_v60, 5 }
 0x7e2   :  { %v3668_v55 = vpop.eup %3667 }
 0x7e3   :  { %v3670_v57 = vpop.eup %3669  ;;  %v1697_v58 = vadd.f32 1.0, %v3668_v55 }
 0x7e4   :  { %v1707_v59 = vadd.f32 1.0, %v3670_v57 }
 0x7e5   :  { %3671 = vrcp.f32 %v1697_v58 }
 0x7e6   :  { %3673 = vrcp.f32 %v1707_v59 }
 0x7ef   :  { %v3672_v62 = vpop.eup %3671 }
 0x7f0   :  { %v3674_v0 = vpop.eup %3673  ;;  %v1713_v2 = vmul.f32 %v3672_v62, %v1711_v61 }
 0x7f1   :  { %v1720_v4 = vmul.f32 %v3674_v0, %v1718_v63  ;;  %v1716_v6 = vsub.f32 1.0, %v3674_v0 }
 0x7f2   :  { %v1714_v5 = vadd.f32 %v1713_v2, %v4173_v8 }
 0x7f4   :  { %3675 = vtanh.f32 %v1714_v5 }
 0x7fe   :  { %v3676_v7 = vpop.eup %3675 }
 0x7ff   :  { %v1717_v10 = vmul.f32 %v3676_v7, %v1716_v6 }
 0x801   :  { %v1721_v11 = vadd.f32 %v1720_v4, %v1717_v10 }
 0x803   :  { %v1723_v12 = vrot.slane %v1721_v11, 3  ;;  %v2712_v13 = vsel %vm2711_vm7, %v2710_v36, %v1721_v11  ;;  %v1964_v41 = vrot.slane %v1721_v11, 7 }
 0x805   :  { %3294 = vmatmul.mubr.msk.f32.vlgmr.msra.gmra.mrb[20].mxu0 %vm85_vm1, %v1723_v12  ;;  %3305 = vmatmul.mubr.msk.f32.vlgmr.msra.gmra.mrb[20].mxu1 %vm85_vm1, %v1723_v12 }
 0x806   :  { %3563 = vmatpush3.bf16.msra.mxu0 %v4097_v34  ;;  %3315 = vmatprep.mubr.msk.f32.mxu0 %vm3770_vm0, %v3771_v9 }
 0x807   :  { %3564 = vmatprep.subr.bf16.mxu0 %v3769_v3  ;;  %3569 = vmatpush3.bf16.msra.mxu1 %v4049_v19 }
 0x808   :  { %3570 = vmatprep.subr.bf16.mxu1 %v3769_v3  ;;  %3326 = vmatprep.mubr.msk.f32.mxu1 %vm3770_vm0, %v3771_v9 }
 0x80a   :  { %3566 = vmatpush3.bf16.msra.mxu0 %v4115_v38 }
 0x80b   :  { %3573 = vmatprep.subr.bf16.mxu0 %v3769_v3  ;;  %3572 = vmatpush3.bf16.msra.mxu1 %v4066_v26 }
 0x80c   :  { %3579 = vmatprep.subr.bf16.mxu1 %v3769_v3 }
 0x80d   :  { %3316 = vmatmul.mubr.msk.f32.vlgmr.msra.gmra.mrb[22].mxu0 %vm85_vm1, %v1723_v12 }
 0x80e   :  { %3575 = vmatpush3.bf16.msra.mxu0 %v4087_v31  ;;  %3337 = vmatprep.mubr.msk.f32.mxu0 %vm3770_vm0, %v3771_v9 }
 0x80f   :  { %3576 = vmatprep.subr.bf16.mxu0 %v3769_v3 }
 0x812   :  { %3578 = vmatpush3.bf16.msra.mxu0 %v4109_v37 }
 0x813   :  { %3585 = vmatprep.subr.bf16.mxu0 %v3769_v3 }
 0x8d8   :  { %v1792_v15 = vpop.f32.mrb[20].mxu0  ;;  %v1862_v16 = vpop.f32.mrb[20].mxu1 }
 0x8d9   :  { %v1793_v17 = vadd.f32 %v1792_v15, %v4146_v44  ;;  %v1863_v14 = vadd.f32 %v1862_v16, %v4158_v54  ;;  %v3295_v20 = vpop.f32.mrb[21].mxu0  ;;  %v3306_v21 = vpop.f32.mrb[21].mxu1 }
 0x8db   :  { %v1937_v22 = vrot.slane %v1793_v17, 4  ;;  %v1947_v23 = vrot.slane %v1863_v14, 4 }
 0x8dd   :  { %v1939_v24 = vadd.f32 %v1937_v22, %v4148_v47  ;;  %v1949_v25 = vadd.f32 %v1947_v23, %v4160_v56 }
 0x8df   :  { %v2881_v27 = vmul.f32 -1.442695, %v1939_v24  ;;  %v2882_v28 = vmul.f32 -1.442695, %v1949_v25 }
 0x8e0   :  { %v1932_v29 = vpop.f32.mrb[22].mxu0 }
 0x8e1   :  { %3677 = vpow2.f32 %v2881_v27  ;;  %v3317_v30 = vpop.f32.mrb[23].mxu0  ;;  %v1933_v18 = vadd.f32 %v1932_v29, %v4167_v1 }
 0x8e2   :  { %3679 = vpow2.f32 %v2882_v28 }
 0x8e3   :  { %v1957_v39 = vrot.slane %v1933_v18, 4 }
 0x8eb   :  { %v3678_v32 = vpop.eup %3677 }
 0x8ec   :  { %v3680_v33 = vpop.eup %3679  ;;  %v1943_v35 = vadd.f32 1.0, %v3678_v32 }
 0x8ed   :  { %v1953_v36 = vadd.f32 1.0, %v3680_v33 }
 0x8ee   :  { %3681 = vrcp.f32 %v1943_v35 }
 0x8ef   :  { %3683 = vrcp.f32 %v1953_v36 }
 0x8f8   :  { %v3682_v40 = vpop.eup %3681 }
 0x8f9   :  { %v3684_v42 = vpop.eup %3683  ;;  %v1959_v43 = vmul.f32 %v3682_v40, %v1957_v39 }
 0x8fa   :  { %v1966_v45 = vmul.f32 %v3684_v42, %v1964_v41  ;;  %v1962_v48 = vsub.f32 1.0, %v3684_v42 }
 0x8fb   :  { %v1960_v46 = vadd.f32 %v1959_v43, %v4173_v8 }
 0x8fd   :  { %3685 = vtanh.f32 %v1960_v46 }
 0x907   :  { %v3686_v49 = vpop.eup %3685 }
 0x908   :  { %v1963_v50 = vmul.f32 %v3686_v49, %v1962_v48 }
 0x90a   :  { %v1967_v51 = vadd.f32 %v1966_v45, %v1963_v50 }
 0x90c   :  { %v1969_v52 = vrot.slane %v1967_v51, 4  ;;  %v2714_v53 = vsel %vm2713_vm8, %v2712_v13, %v1967_v51  ;;  %v2210_v14 = vrot.slane %v1967_v51, 7 }
 0x90e   :  { %3327 = vmatmul.mubr.msk.f32.vlgmr.msra.gmra.mrb[22].mxu1 %vm85_vm1, %v1969_v52  ;;  %3338 = vmatmul.mubr.msk.f32.vlgmr.msra.gmra.mrb[24].mxu0 %vm85_vm1, %v1969_v52 }
 0x90f   :  { %3581 = vmatpush3.bf16.msra.mxu1 %v4097_v34  ;;  %3348 = vmatprep.mubr.msk.f32.mxu1 %vm3770_vm0, %v3771_v9 }
 0x910   :  { %3582 = vmatprep.subr.bf16.mxu1 %v3769_v3  ;;  %3587 = vmatpush3.bf16.msra.mxu0 %v4049_v19 }
 0x911   :  { %3588 = vmatprep.subr.bf16.mxu0 %v3769_v3  ;;  %3359 = vmatprep.mubr.msk.f32.mxu0 %vm3770_vm0, %v3771_v9 }
 0x913   :  { %3584 = vmatpush3.bf16.msra.mxu1 %v4115_v38 }
 0x914   :  { %3591 = vmatprep.subr.bf16.mxu1 %v3769_v3  ;;  %3590 = vmatpush3.bf16.msra.mxu0 %v4066_v26 }
 0x915   :  { %3597 = vmatprep.subr.bf16.mxu0 %v3769_v3 }
 0x916   :  { %3349 = vmatmul.mubr.msk.f32.vlgmr.msra.gmra.mrb[24].mxu1 %vm85_vm1, %v1969_v52 }
 0x917   :  { %3593 = vmatpush3.bf16.msra.mxu1 %v4087_v31  ;;  %3370 = vmatprep.mubr.msk.f32.mxu1 %vm3770_vm0, %v3771_v9 }
 0x918   :  { %3594 = vmatprep.subr.bf16.mxu1 %v3769_v3 }
 0x91b   :  { %3596 = vmatpush3.bf16.msra.mxu1 %v4109_v37 }
 0x91c   :  { %3603 = vmatprep.subr.bf16.mxu1 %v3769_v3 }
 0x9e1   :  { %v2038_v55 = vpop.f32.mrb[22].mxu1  ;;  %v2108_v57 = vpop.f32.mrb[24].mxu0 }
 0x9e2   :  { %v2039_v58 = vadd.f32 %v2038_v55, %v4146_v44  ;;  %v2109_v59 = vadd.f32 %v2108_v57, %v4158_v54  ;;  %v3328_v60 = vpop.f32.mrb[23].mxu1  ;;  %v3339_v61 = vpop.f32.mrb[25].mxu0 }
 0x9e4   :  { %v2183_v62 = vrot.slane %v2039_v58, 3  ;;  %v2193_v63 = vrot.slane %v2109_v59, 3 }
 0x9e6   :  { %v2185_v0 = vadd.f32 %v2183_v62, %v4148_v47  ;;  %v2195_v2 = vadd.f32 %v2193_v63, %v4160_v56 }
 0x9e8   :  { %v2886_v4 = vmul.f32 -1.442695, %v2185_v0  ;;  %v2887_v5 = vmul.f32 -1.442695, %v2195_v2 }
 0x9e9   :  { %v2178_v6 = vpop.f32.mrb[24].mxu1 }
 0x9ea   :  { %3687 = vpow2.f32 %v2886_v4  ;;  %v3350_v7 = vpop.f32.mrb[25].mxu1  ;;  %v2179_v15 = vadd.f32 %v2178_v6, %v4167_v1  ;;  %v2721_v4 = vld [vmem:[%s4425_s21] sm:$0xff] }
 0x9eb   :  { %3689 = vpow2.f32 %v2887_v5  ;;  %v2723_v5 = vld [vmem:[%s4425_s21 + $0x10] sm:$0xff] }
 0x9ec   :  { %v2203_v16 = vrot.slane %v2179_v15, 3 }
 0x9f4   :  { %v3688_v10 = vpop.eup %3687 }
 0x9f5   :  { %v3690_v11 = vpop.eup %3689  ;;  %v2189_v12 = vadd.f32 1.0, %v3688_v10 }
 0x9f6   :  { %v2199_v13 = vadd.f32 1.0, %v3690_v11 }
 0x9f7   :  { %3691 = vrcp.f32 %v2189_v12 }
 0x9f8   :  { %3693 = vrcp.f32 %v2199_v13 }
 0xa01   :  { %v3692_v17 = vpop.eup %3691 }
 0xa02   :  { %v3694_v20 = vpop.eup %3693  ;;  %v2205_v21 = vmul.f32 %v3692_v17, %v2203_v16 }
 0xa03   :  { %v2212_v22 = vmul.f32 %v3694_v20, %v2210_v14  ;;  %v2208_v24 = vsub.f32 1.0, %v3694_v20 }
 0xa04   :  { %v2206_v23 = vadd.f32 %v2205_v21, %v4173_v8 }
 0xa06   :  { %3695 = vtanh.f32 %v2206_v23 }
 0xa10   :  { %v3696_v25 = vpop.eup %3695 }
 0xa11   :  { %v2209_v27 = vmul.f32 %v3696_v25, %v2208_v24 }
 0xa13   :  { %v2213_v28 = vadd.f32 %v2212_v22, %v2209_v27 }
 0xa15   :  { %v2215_v29 = vrot.slane %v2213_v28, 5  ;;  %v2716_v30 = vsel %vm2715_vm9, %v2714_v53, %v2213_v28  ;;  %v2456_v53 = vrot.slane %v2213_v28, 7 }
 0xa17   :  { %3360 = vmatmul.mubr.msk.f32.vlgmr.msra.gmra.mrb[26].mxu0 %vm85_vm1, %v2215_v29  ;;  %3371 = vmatmul.mubr.msk.f32.vlgmr.msra.gmra.mrb[26].mxu1 %vm85_vm1, %v2215_v29 }
 0xa18   :  { %3599 = vmatpush3.bf16.msra.mxu0 %v4097_v34  ;;  %3381 = vmatprep.mubr.msk.f32.mxu0 %vm3770_vm0, %v3771_v9 }
 0xa19   :  { %3600 = vmatprep.subr.bf16.mxu0 %v3769_v3  ;;  %3605 = vmatpush3.bf16.msra.mxu1 %v4049_v19 }
 0xa1a   :  { %3606 = vmatprep.subr.bf16.mxu1 %v3769_v3  ;;  %3392 = vmatprep.mubr.msk.f32.mxu1 %vm3770_vm0, %v3771_v9 }
 0xa1c   :  { %3602 = vmatpush3.bf16.msra.mxu0 %v4115_v38 }
 0xa1d   :  { %3609 = vmatprep.subr.bf16.mxu0 %v3769_v3  ;;  %3608 = vmatpush3.bf16.msra.mxu1 %v4066_v26 }
 0xa1e   :  { %3615 = vmatprep.subr.bf16.mxu1 %v3769_v3 }
 0xa1f   :  { %3382 = vmatmul.mubr.msk.f32.vlgmr.msra.gmra.mrb[28].mxu0 %vm85_vm1, %v2215_v29 }
 0xa20   :  { %3611 = vmatpush3.bf16.msra.mxu0 %v4087_v31  ;;  %3403 = vmatprep.mubr.msk.f32.mxu0 %vm3770_vm0, %v3771_v9 }
 0xa21   :  { %3612 = vmatprep.subr.bf16.mxu0 %v3769_v3 }
 0xa24   :  { %3614 = vmatpush3.bf16.msra.mxu0 %v4109_v37 }
 0xa25   :  { %3621 = vmatprep.subr.bf16.mxu0 %v3769_v3 }
 0xaea   :  { %v2284_v19 = vpop.f32.mrb[26].mxu0  ;;  %v2354_v32 = vpop.f32.mrb[26].mxu1 }
 0xaeb   :  { %v2285_v33 = vadd.f32 %v2284_v19, %v4146_v44  ;;  %v2355_v26 = vadd.f32 %v2354_v32, %v4158_v54  ;;  %v3361_v35 = vpop.f32.mrb[27].mxu0  ;;  %v3372_v36 = vpop.f32.mrb[27].mxu1 }
 0xaed   :  { %v2429_v18 = vrot.slane %v2285_v33, 2  ;;  %v2439_v39 = vrot.slane %v2355_v26, 2 }
 0xaef   :  { %v2431_v31 = vadd.f32 %v2429_v18, %v4148_v47  ;;  %v2441_v40 = vadd.f32 %v2439_v39, %v4160_v56 }
 0xaf1   :  { %v2891_v41 = vmul.f32 -1.442695, %v2431_v31  ;;  %v2892_v42 = vmul.f32 -1.442695, %v2441_v40 }
 0xaf2   :  { %v2424_v43 = vpop.f32.mrb[28].mxu0 }
 0xaf3   :  { %3697 = vpow2.f32 %v2891_v41  ;;  %v3383_v37 = vpop.f32.mrb[29].mxu0  ;;  %v2425_v50 = vadd.f32 %v2424_v43, %v4167_v1 }
 0xaf4   :  { %3699 = vpow2.f32 %v2892_v42 }
 0xaf5   :  { %v2449_v51 = vrot.slane %v2425_v50, 2 }
 0xafd   :  { %v3698_v45 = vpop.eup %3697 }
 0xafe   :  { %v3700_v46 = vpop.eup %3699  ;;  %v2435_v48 = vadd.f32 1.0, %v3698_v45 }
 0xaff   :  { %v2445_v49 = vadd.f32 1.0, %v3700_v46 }
 0xb00   :  { %3701 = vrcp.f32 %v2435_v48 }
 0xb01   :  { %3703 = vrcp.f32 %v2445_v49 }
 0xb0a   :  { %v3702_v52 = vpop.eup %3701 }
 0xb0b   :  { %v3704_v55 = vpop.eup %3703  ;;  %v2451_v57 = vmul.f32 %v3702_v52, %v2449_v51 }
 0xb0c   :  { %v2458_v58 = vmul.f32 %v3704_v55, %v2456_v53  ;;  %v2454_v60 = vsub.f32 1.0, %v3704_v55 }
 0xb0d   :  { %v2452_v59 = vadd.f32 %v2451_v57, %v4173_v8 }
 0xb0f   :  { %3705 = vtanh.f32 %v2452_v59 }
 0xb19   :  { %v3706_v61 = vpop.eup %3705 }
 0xb1a   :  { %v2455_v62 = vmul.f32 %v3706_v61, %v2454_v60 }
 0xb1c   :  { %v2459_v63 = vadd.f32 %v2458_v58, %v2455_v62 }
 0xb1e   :  { %v2461_v0 = vrot.slane %v2459_v63, 6  ;;  %v2718_v2 = vsel %vm2717_vm10, %v2716_v30, %v2459_v63  ;;  %v2702_v30 = vrot.slane %v2459_v63, 7 }
 0xb20   :  { %3393 = vmatmul.mubr.msk.f32.vlgmr.msra.gmra.mrb[28].mxu1 %vm85_vm1, %v2461_v0  ;;  %3404 = vmatmul.mubr.msk.f32.vlgmr.msra.gmra.mrb[30].mxu0 %vm85_vm1, %v2461_v0 }
 0xb21   :  { %3617 = vmatpush3.bf16.msra.mxu1 %v4097_v34  ;;  %3414 = vmatprep.mubr.msk.f32.mxu1 %vm3770_vm0, %v3771_v9  ;;  %v2722_v34 = vld [vmem:[%s4425_s21 + $0x8] sm:$0xff] }
 0xb22   :  { %3618 = vmatprep.subr.bf16.mxu1 %v3769_v3  ;;  %3425 = vmatprep.mubr.msk.f32.mxu0 %vm3770_vm0, %v3771_v9  ;;  %v3622_v6 = vpack.c.bf16 %v2722_v34, %v2721_v4  ;;  %v2724_v9 = vld [vmem:[%s4425_s21 + $0x18] sm:$0xff] }
 0xb24   :  { %3623 = vmatpush3.bf16.msra.mxu0 %v3622_v6 }
 0xb25   :  { %3620 = vmatpush3.bf16.msra.mxu1 %v4115_v38  ;;  %v3625_v38 = vpack.c.bf16 %v2724_v9, %v2723_v5  ;;  %3624 = vmatprep.subr.bf16.mxu0 %v3769_v3 }
 0xb28   :  { %3415 = vmatmul.mubr.msk.f32.vlgmr.msra.gmra.mrb[30].mxu1 %vm85_vm1, %v2461_v0  ;;  %3626 = vmatpush3.bf16.msra.mxu0 %v3625_v38 }
 0xbf3   :  { %v2530_v7 = vpop.f32.mrb[28].mxu1  ;;  %v2600_v10 = vpop.f32.mrb[30].mxu0 }
 0xbf4   :  { %v2531_v11 = vadd.f32 %v2530_v7, %v4146_v44  ;;  %v2601_v12 = vadd.f32 %v2600_v10, %v4158_v54  ;;  %v3394_v13 = vpop.f32.mrb[29].mxu1  ;;  %v3405_v15 = vpop.f32.mrb[31].mxu0 }
 0xbf6   :  { %v2675_v16 = vrot.slane %v2531_v11, 1  ;;  %v2685_v17 = vrot.slane %v2601_v12, 1 }
 0xbf8   :  { %v2677_v14 = vadd.f32 %v2675_v16, %v4148_v47  ;;  %v2687_v20 = vadd.f32 %v2685_v17, %v4160_v56 }
 0xbfa   :  { %v2896_v21 = vmul.f32 -1.442695, %v2677_v14  ;;  %v2897_v22 = vmul.f32 -1.442695, %v2687_v20 }
 0xbfb   :  { %v2670_v23 = vpop.f32.mrb[30].mxu1 }
 0xbfc   :  { %3707 = vpow2.f32 %v2896_v21  ;;  %v3416_v3 = vpop.f32.mrb[31].mxu1  ;;  %v2671_v54 = vadd.f32 %v2670_v23, %v4167_v1  ;;  %v2898_v1 = vld [vmem:[%s4426_s22] ss:$0 sm:$0xff] }
 0xbfd   :  { %3709 = vpow2.f32 %v2897_v22 }
 0xbfe   :  { %v2695_v28 = vrot.slane %v2671_v54, 1 }
 0xc06   :  { %v3708_v24 = vpop.eup %3707 }
 0xc07   :  { %v3710_v25 = vpop.eup %3709  ;;  %v2681_v27 = vadd.f32 1.0, %v3708_v24 }
 0xc08   :  { %v2691_v44 = vadd.f32 1.0, %v3710_v25 }
 0xc09   :  { %3711 = vrcp.f32 %v2681_v27 }
 0xc0a   :  { %3713 = vrcp.f32 %v2691_v44 }
 0xc13   :  { %v3712_v29 = vpop.eup %3711 }
 0xc14   :  { %v3714_v47 = vpop.eup %3713  ;;  %v2697_v19 = vmul.f32 %v3712_v29, %v2695_v28 }
 0xc15   :  { %v2704_v56 = vmul.f32 %v3714_v47, %v2702_v30  ;;  %v2700_v33 = vsub.f32 1.0, %v3714_v47 }
 0xc16   :  { %v2698_v32 = vadd.f32 %v2697_v19, %v4173_v8 }
 0xc18   :  { %3715 = vtanh.f32 %v2698_v32 }
 0xc22   :  { %v3716_v26 = vpop.eup %3715 }
 0xc23   :  { %v2701_v35 = vmul.f32 %v3716_v26, %v2700_v33 }
 0xc25   :  { %v2705_v36 = vadd.f32 %v2704_v56, %v2701_v35 }
 0xc27   :  { %v2720_v18 = vsel %vm2719_vm11, %v2718_v2, %v2705_v36  ;;  %2707 = vst.msk [vmem:[#allocation4 - $0x7] sm:$0x80] %vm2706_vm12, %v2705_v36 }
 0xc28   :  { %3426 = vmatmul.mubr.msk.f32.vlgmr.msra.gmra.mrb[32].mxu0 %vm85_vm1, %v2720_v18 }
 0xcfb   :  { %v2801_v39 = vpop.f32.mrb[32].mxu0 }
 0xcfc   :  { %v2802_v31 = vadd.f32 %v2898_v1, %v2801_v39  ;;  %v3427_v40 = vpop.f32.mrb[33].mxu0 }
 0xcfe   :  { %2805 = vmax.xlane.f32.xlu1 %v2802_v31 }
 0xd8b   :  { %v2806_v8 = vpop.xlane.xlu1 %2805 }
 0xd8c   :  { %v2807_v41 = vsub.f32 %v2802_v31, %v2806_v8 }
 0xd8e   :  { %v2808_v42 = vmul.f32 1.442695, %v2807_v41 }
 0xd90   :  { %3717 = vpow2.f32 %v2808_v42 }
 0xd9a   :  { %v3718_v43 = vpop.eup %3717 }
 0xd9b   :  { %2810 = vadd.xlane.f32.xlu1 %v3718_v43 }
 0xd9c   :  { %3732 = shalt.err (!%p3729_p4)
}
 0xd9d   :  { %s3733_s7 = scalar_lea.hbm %s4428_s24, 16 }
 0xd9e   :  { %p3734_p5 = scmp.ne.s32.totalorder %s4428_s24, %s3733_s7  ;;  %p3737_p6 = scmp.lt.u32.totalorder %s3733_s7, %s4428_s24 }
 0xda0   :  { %p3739_p7 = pnand %p3737_p6, %p3734_p5 }
 0xda2   :  { %3742 = shalt.err (!%p3739_p7)
}
 0xda3   :  { %2836 = dma.vmem_to_hbm [thread:$0]  %s2834_s6, 16, %s4428_s24, [#allocation5]  }
 0xda4   :  { %s3774_s12 = smov [#allocation2]  }
 0xda5   :  { %s2823_s9 = sshll.u32 %s3774_s12, 4  ;;  %s2824_s9 = int_to_ptr.vmem [resolvable:$true] %s2823_s9 }
 0xda6   :  { %s3743_s13 = scalar_lea.vmem %s2824_s9, 128  ;;  %p3748_p9 = scmp.lt.s32.totalorder %s2824_s9, %s2824_s9 }
 0xda7   :  { %p3744_p8 = scmp.ne.s32.totalorder %s2824_s9, %s3743_s13  ;;  %p3749_p10 = scmp.lt.s32.totalorder %s3743_s13, %s3743_s13 }
 0xda9   :  { %p3750_p11 = por %p3749_p10, %p3748_p9 }
 0xdab   :  { %p3751_p12 = pnand %p3750_p11, %p3744_p8 }
 0xe28   :  { %v2811_v37 = vpop.xlane.xlu1 %2810 }
 0xe29   :  { %3719 = vlog2.f32 %v2811_v37 }
 0xe33   :  { %v3720_v45 = vpop.eup %3719 }
 0xe34   :  { %v2813_v46 = vmul.f32 0.6931472, %v3720_v45 }
 0xe36   :  { %v2814_v48 = vadd.f32 %v2813_v46, %v2806_v8 }
 0xe38   :  { %v2815_v49 = vsub.f32 %v2802_v31, %v2814_v48 }
 0xe3a   :  { %2816 = vst [vmem:[#allocation2] sm:$0xff] %v2815_v49 }
 0xe3b   :  { %3754 = shalt.err (!%p3751_p12)
}
 0xe3c   :  { %s3755_s24 = scalar_lea.hbm %s4427_s23, 128 }
 0xe3d   :  { %p3756_p13 = scmp.ne.s32.totalorder %s4427_s23, %s3755_s24  ;;  %p3759_p0 = scmp.lt.u32.totalorder %s3755_s24, %s4427_s23 }
 0xe3f   :  { %p3761_p1 = pnand %p3759_p0, %p3756_p13 }
 0xe41   :  { %3764 = shalt.err (!%p3761_p1)
}
 0xe42   :  { %2826 = dma.vmem_to_hbm [thread:$0]  %s2824_s9, 128, %s4427_s23, [#allocation3]  }
 0xe43   :  { %3765 = dma.done.wait [#allocation3], 128  }
 0xe44   :  { %3766 = vsyncadd [#allocation3], 4294967168 }
 0xe45   :  { %3767 = dma.done.wait [#allocation5], 16  }
 0xe46   :  { %3768 = vsyncadd [#allocation5], 4294967280 }
 0xe47   :  { %2843 = vsyncpa [#allocation3], 1 }
 0xe48   :  { %2844 = vsyncpa [#allocation5], 1 }

</bundles_post_ra>
